<compile_context>
chip_gen: v7x
topology: tpu7x:2x2x1
jax: 0.10.0
libtpu: 0.0.40
codegen_flags: <defaults>
</compile_context>

<pallas_src>
import math
import functools

import numpy as np
import jax
import jax.numpy as jnp
from jax.experimental import pallas as pl
from jax.experimental.pallas import tpu as pltpu


# Flip to jnp.bfloat16 on v6e / v7x for ~2x MXU throughput and halved weight DMA bytes
# (f32 accumulation is always used).  Kept f32 so the demo matches the f32 reference.
GEMM_DTYPE = jnp.float32

# Explicit scoped-VMEM budget for the heavy kernels (defaults are only 16/32 MiB).
# 48 MiB leaves headroom under v7x's 64 MiB physical VMEM and is safe on v5e/v6e.
VMEM_LIMIT = 48 * 1024 * 1024


def _round_up(x, m):
    return ((x + m - 1) // m) * m


def _pick_tile(m, candidates=(512, 256, 128, 64, 32, 16, 8)):
    for t in candidates:
        if m % t == 0:
            return t
    return m


def _seq_tiles(s):
    """(q_tile, kv_tile, padded_seq_len) for the encoder stack."""
    if s >= 1024:
        # Sized for v7x (64 MiB VMEM): score tile 256x512xf32 = 512 KB, double-buffered
        # K/V tiles ~128 KB each.  Also fine on v5e/v6e (128 MiB).
        t_q, t_kv = 256, 512
    elif s >= 128:
        t_q = t_kv = 128
    else:
        t_q = t_kv = _round_up(s, 8)
    s_pad = _round_up(s, max(t_q, t_kv))
    return t_q, t_kv, s_pad


def _mm(a, b):
    """MXU matmul with f32 accumulation; operands (optionally) down-cast to GEMM_DTYPE."""
    return jnp.dot(a.astype(GEMM_DTYPE), b.astype(GEMM_DTYPE),
                   preferred_element_type=jnp.float32)


# ----------------------------------------------------------------------------
# Kernel 1: input Linear (sqrt(d_model) folded into W,b) + positional encoding
# ----------------------------------------------------------------------------
def _input_embed_kernel(x_ref, w_ref, b_ref, pe_ref, o_ref):
    o_ref[0] = (_mm(x_ref[0], w_ref[...]) + b_ref[...] + pe_ref[...]).astype(o_ref.dtype)


def pallas_input_embed(x, w, b, pe, scale):
    """x: [B, S_pad, I], pe: [S_pad, D] -> [B, S_pad, D]."""
    B, S_pad, I = x.shape
    D = w.shape[1]
    TS = _pick_tile(S_pad)
    w_s = (w * scale).astype(GEMM_DTYPE)          # fold sqrt(d_model) into the weights
    b_s = (b * scale).reshape(1, D).astype(jnp.float32)
    return pl.pallas_call(
        _input_embed_kernel,
        out_shape=jax.ShapeDtypeStruct((B, S_pad, D), jnp.float32),
        grid=(B, S_pad // TS),
        in_specs=[
            pl.BlockSpec((1, TS, I), lambda bi, si: (bi, si, 0)),
            pl.BlockSpec((I, D), lambda bi, si: (0, 0)),
            pl.BlockSpec((1, D), lambda bi, si: (0, 0)),
            pl.BlockSpec((TS, D), lambda bi, si: (si, 0)),
        ],
        out_specs=pl.BlockSpec((1, TS, D), lambda bi, si: (bi, si, 0)),
        compiler_params=pltpu.CompilerParams(
            dimension_semantics=("parallel", "parallel"),
            vmem_limit_bytes=VMEM_LIMIT),
    )(x, w_s, b_s, pe)


# ----------------------------------------------------------------------------
# Kernel 2a: QKV projection, head-major output (head split at BlockSpec level)
# ----------------------------------------------------------------------------
def _qkv_proj_kernel(x_ref, wq_ref, wk_ref, wv_ref, bq_ref, bk_ref, bv_ref,
                     q_ref, k_ref, v_ref):
    x = x_ref[0]                                             # [Ts, D]
    q_ref[0, 0] = (_mm(x, wq_ref[0]) + bq_ref[0]).astype(q_ref.dtype)
    k_ref[0, 0] = (_mm(x, wk_ref[0]) + bk_ref[0]).astype(k_ref.dtype)
    v_ref[0, 0] = (_mm(x, wv_ref[0]) + bv_ref[0]).astype(v_ref.dtype)


# ----------------------------------------------------------------------------
# Kernel 2b: flash attention (online softmax over KV tiles)
# ----------------------------------------------------------------------------
def _flash_kernel(q_ref, k_ref, v_ref, o_ref, m_sc, l_sc, acc_sc,
                  *, s_valid, t_kv, masked):
    kv = pl.program_id(3)

    @pl.when(kv == 0)
    def _():
        m_sc[...] = jnp.full_like(m_sc, -jnp.inf)
        l_sc[...] = jnp.zeros_like(l_sc)
        acc_sc[...] = jnp.zeros_like(acc_sc)

    q = q_ref[0, 0]                                          # [Tq, Dh]  (1/sqrt(Dh) pre-folded)
    k = k_ref[0, 0]                                          # [Tkv, Dh]
    v = v_ref[0, 0]                                          # [Tkv, Dh]

    s = jax.lax.dot_general(q.astype(GEMM_DTYPE), k.astype(GEMM_DTYPE),
                            (((1,), (1,)), ((), ())),
                            preferred_element_type=jnp.float32)   # [Tq, Tkv]
    if masked:
        key_idx = kv * t_kv + jax.lax.broadcasted_iota(jnp.int32, s.shape, 1)
        s = jnp.where(key_idx < s_valid, s, -jnp.inf)

    m_prev = m_sc[...]
    m_new = jnp.maximum(m_prev, jnp.max(s, axis=-1, keepdims=True))
    alpha = jnp.exp(m_prev - m_new)
    p = jnp.exp(s - m_new)
    l_sc[...] = alpha * l_sc[...] + jnp.sum(p, axis=-1, keepdims=True)
    acc_sc[...] = alpha * acc_sc[...] + _mm(p, v)
    m_sc[...] = m_new

    @pl.when(kv == pl.num_programs(3) - 1)
    def _():
        o_ref[0, 0] = (acc_sc[...] * pl.reciprocal(l_sc[...], approx=True)
                       ).astype(o_ref.dtype)


# ----------------------------------------------------------------------------
# Kernel 2c: folded output projection + residual + LayerNorm
# ----------------------------------------------------------------------------
def _attn_out_ln_kernel(ctx_ref, wo_ref, bo_ref, x_ref, g_ref, bt_ref, o_ref,
                        *, num_heads, eps):
    x = x_ref[0]                                             # [Tq, D]
    # concat_h(o_h) @ Wo == sum_h o_h @ Wo[h]  (no lane-dim concatenate needed)
    acc = _mm(ctx_ref[0, 0], wo_ref[0])
    for hh in range(1, num_heads):
        acc = acc + _mm(ctx_ref[0, hh], wo_ref[hh])
    y = x + acc + bo_ref[...]
    mu = jnp.mean(y, axis=-1, keepdims=True)
    var = jnp.mean(jnp.square(y - mu), axis=-1, keepdims=True)
    o_ref[0] = ((y - mu) * jax.lax.rsqrt(var + eps) * g_ref[...] + bt_ref[...]
                ).astype(o_ref.dtype)


def pallas_attention_block(x, layer, num_heads, t_q, t_kv, s_valid, eps=1e-5):
    """x: [B, S_pad, D] -> LN(x + MHA(x)) : [B, S_pad, D]."""
    B, S_pad, D = x.shape
    H = num_heads
    Dh = D // H
    scale = 1.0 / math.sqrt(Dh)
    nQ = S_pad // t_q
    nKV = S_pad // t_kv
    masked = (s_valid != S_pad)

    # Wrapper-side weight prep (in production these transforms are hoisted/done once):
    w_in, b_in = layer["in_proj_w"], layer["in_proj_b"]

    def per_head(wi, bi, s=1.0):
        wh = (wi.reshape(D, H, Dh).transpose(1, 0, 2) * s).astype(GEMM_DTYPE)  # [H, D, Dh]
        bh = (bi.reshape(H, 1, Dh) * s).astype(jnp.float32)                    # [H, 1, Dh]
        return wh, bh

    wq, bq = per_head(w_in[:, :D], b_in[:D], scale)          # 1/sqrt(Dh) baked into Q
    wk, bk = per_head(w_in[:, D:2 * D], b_in[D:2 * D])
    wv, bv = per_head(w_in[:, 2 * D:], b_in[2 * D:])
    wo = layer["out_proj_w"].reshape(H, Dh, D).astype(GEMM_DTYPE)
    bo = layer["out_proj_b"].reshape(1, D)
    g = layer["ln1_g"].reshape(1, D)
    bt = layer["ln1_b"].reshape(1, D)

    # --- QKV projection, head-major [B, H, S_pad, Dh] ---
    qkv_shape = jax.ShapeDtypeStruct((B, H, S_pad, Dh), jnp.float32)
    hspec = pl.BlockSpec((1, D, Dh), lambda b_, i, h_: (h_, 0, 0))
    bspec = pl.BlockSpec((1, 1, Dh), lambda b_, i, h_: (h_, 0, 0))
    ospec = pl.BlockSpec((1, 1, t_q, Dh), lambda b_, i, h_: (b_, h_, i, 0))
    q, k, v = pl.pallas_call(
        _qkv_proj_kernel,
        out_shape=(qkv_shape, qkv_shape, qkv_shape),
        grid=(B, nQ, H),
        in_specs=[
            pl.BlockSpec((1, t_q, D), lambda b_, i, h_: (b_, i, 0)),
            hspec, hspec, hspec, bspec, bspec, bspec,
        ],
        out_specs=(ospec, ospec, ospec),
        compiler_params=pltpu.CompilerParams(
            dimension_semantics=("parallel", "parallel", "parallel"),
            vmem_limit_bytes=VMEM_LIMIT),
    )(x, wq, wk, wv, bq, bk, bv)

    # --- flash attention: grid (B, H, Q-tiles, KV-tiles), KV is the reduction axis ---
    ctx = pl.pallas_call(
        functools.partial(_flash_kernel, s_valid=s_valid, t_kv=t_kv, masked=masked),
        out_shape=jax.ShapeDtypeStruct((B, H, S_pad, Dh), jnp.float32),
        grid=(B, H, nQ, nKV),
        in_specs=[
            pl.BlockSpec((1, 1, t_q, Dh), lambda b_, h_, i, j: (b_, h_, i, 0)),
            pl.BlockSpec((1, 1, t_kv, Dh), lambda b_, h_, i, j: (b_, h_, j, 0)),
            pl.BlockSpec((1, 1, t_kv, Dh), lambda b_, h_, i, j: (b_, h_, j, 0)),
        ],
        out_specs=pl.BlockSpec((1, 1, t_q, Dh), lambda b_, h_, i, j: (b_, h_, i, 0)),
        scratch_shapes=[
            pltpu.VMEM((t_q, 1), jnp.float32),      # m
            pltpu.VMEM((t_q, 1), jnp.float32),      # l
            pltpu.VMEM((t_q, Dh), jnp.float32),     # acc
        ],
        compiler_params=pltpu.CompilerParams(
            dimension_semantics=("parallel", "parallel", "parallel", "arbitrary"),
            vmem_limit_bytes=VMEM_LIMIT),
    )(q, k, v)

    # --- folded out-projection + residual + LayerNorm ---
    return pl.pallas_call(
        functools.partial(_attn_out_ln_kernel, num_heads=H, eps=eps),
        out_shape=jax.ShapeDtypeStruct((B, S_pad, D), jnp.float32),
        grid=(B, nQ),
        in_specs=[
            pl.BlockSpec((1, H, t_q, Dh), lambda b_, i: (b_, 0, i, 0)),
            pl.BlockSpec((H, Dh, D), lambda b_, i: (0, 0, 0)),
            pl.BlockSpec((1, D), lambda b_, i: (0, 0)),
            pl.BlockSpec((1, t_q, D), lambda b_, i: (b_, i, 0)),
            pl.BlockSpec((1, D), lambda b_, i: (0, 0)),
            pl.BlockSpec((1, D), lambda b_, i: (0, 0)),
        ],
        out_specs=pl.BlockSpec((1, t_q, D), lambda b_, i: (b_, i, 0)),
        compiler_params=pltpu.CompilerParams(
            dimension_semantics=("parallel", "parallel"),
            vmem_limit_bytes=VMEM_LIMIT),
    )(ctx, wo, bo, x, g, bt)


# ----------------------------------------------------------------------------
# Kernel 3: feed-forward block (FF1 + relu + FF2 + residual + LN), fused
# ----------------------------------------------------------------------------
def _ffn_block_kernel(x_ref, w1_ref, b1_ref, w2_ref, b2_ref, g_ref, bt_ref,
                      o_ref, *, eps):
    x = x_ref[...]                                           # [TM, D]
    h = jnp.maximum(_mm(x, w1_ref[...]) + b1_ref[...], 0.0)  # [TM, F] stays in VMEM
    y = x + _mm(h, w2_ref[...]) + b2_ref[...]
    mu = jnp.mean(y, axis=-1, keepdims=True)
    var = jnp.mean(jnp.square(y - mu), axis=-1, keepdims=True)
    o_ref[...] = ((y - mu) * jax.lax.rsqrt(var + eps) * g_ref[...] + bt_ref[...]
                  ).astype(o_ref.dtype)


def pallas_ffn_block(x, w1, b1, w2, b2, gamma, beta, eps=1e-5):
    """x: [M, D] -> LN(x + FF2(relu(FF1(x)))) : [M, D].  M is already tile-friendly."""
    M, D = x.shape
    F = w1.shape[1]
    TM = _pick_tile(M)
    return pl.pallas_call(
        functools.partial(_ffn_block_kernel, eps=eps),
        out_shape=jax.ShapeDtypeStruct((M, D), jnp.float32),
        grid=(M // TM,),
        in_specs=[
            pl.BlockSpec((TM, D), lambda i: (i, 0)),
            pl.BlockSpec((D, F), lambda i: (0, 0)),
            pl.BlockSpec((1, F), lambda i: (0, 0)),
            pl.BlockSpec((F, D), lambda i: (0, 0)),
            pl.BlockSpec((1, D), lambda i: (0, 0)),
            pl.BlockSpec((1, D), lambda i: (0, 0)),
            pl.BlockSpec((1, D), lambda i: (0, 0)),
        ],
        out_specs=pl.BlockSpec((TM, D), lambda i: (i, 0)),
        compiler_params=pltpu.CompilerParams(
            dimension_semantics=("parallel",),
            vmem_limit_bytes=VMEM_LIMIT),
    )(x, w1.astype(GEMM_DTYPE), b1.reshape(1, F), w2.astype(GEMM_DTYPE),
      b2.reshape(1, D), gamma.reshape(1, D), beta.reshape(1, D))


# ----------------------------------------------------------------------------
# Kernel 4: masked mean-pool over seq (tiled, accumulator) + output Linear
# ----------------------------------------------------------------------------
def _pool_head_kernel(x_ref, w_ref, b_ref, o_ref, acc_sc, *, s_valid, t_s, masked):
    si = pl.program_id(1)

    @pl.when(si == 0)
    def _():
        acc_sc[...] = jnp.zeros_like(acc_sc)

    x = x_ref[0]                                             # [Ts, D]
    if masked:
        row = si * t_s + jax.lax.broadcasted_iota(jnp.int32, x.shape, 0)
        x = jnp.where(row < s_valid, x, 0.0)
    acc_sc[...] += jnp.sum(x, axis=0, keepdims=True)

    @pl.when(si == pl.num_programs(1) - 1)
    def _():
        pooled = acc_sc[...] * (1.0 / s_valid)               # [1, D]
        o_ref[0] = (_mm(pooled, w_ref[...]) + b_ref[...]).astype(o_ref.dtype)


def pallas_pool_head(x, w, b, s_valid):
    """x: [B, S_pad, D] -> logits [B, C] (mean over the first s_valid rows)."""
    B, S_pad, D = x.shape
    C = w.shape[1]
    TS = _pick_tile(S_pad)
    masked = (s_valid != S_pad)
    out = pl.pallas_call(
        functools.partial(_pool_head_kernel, s_valid=s_valid, t_s=TS, masked=masked),
        out_shape=jax.ShapeDtypeStruct((B, 1, C), jnp.float32),
        grid=(B, S_pad // TS),
        in_specs=[
            pl.BlockSpec((1, TS, D), lambda b_, i: (b_, i, 0)),
            pl.BlockSpec((D, C), lambda b_, i: (0, 0)),
            pl.BlockSpec((1, C), lambda b_, i: (0, 0)),
        ],
        out_specs=pl.BlockSpec((1, 1, C), lambda b_, i: (b_, 0, 0)),
        scratch_shapes=[pltpu.VMEM((1, D), jnp.float32)],
        compiler_params=pltpu.CompilerParams(
            dimension_semantics=("parallel", "arbitrary"),
            vmem_limit_bytes=VMEM_LIMIT),
    )(x, w.astype(GEMM_DTYPE), b.reshape(1, C))
    return out.reshape(B, C)


# ----------------------------------------------------------------------------
# Model (parameters + forward)
# ----------------------------------------------------------------------------
def init_params(key, input_dim, d_model, num_heads, num_layers, num_classes,
                dim_feedforward, max_len):
    def lin(k, fan_in, fan_out):
        kw, kb = jax.random.split(k)
        w = 0.05 * jax.random.normal(kw, (fan_in, fan_out), jnp.float32)
        b = 0.05 * jax.random.normal(kb, (fan_out,), jnp.float32)
        return w, b

    keys = jax.random.split(key, 2 + num_layers)
    params = {}
    params["in_w"], params["in_b"] = lin(keys[0], input_dim, d_model)
    params["out_w"], params["out_b"] = lin(keys[1], d_model, num_classes)

    # sinusoidal positional encoding (same construction as the PyTorch module)
    position = jnp.arange(max_len, dtype=jnp.float32)[:, None]
    div_term = jnp.exp(
        jnp.arange(0, d_model, 2, dtype=jnp.float32) * (-np.log(10000.0) / d_model))
    pe = jnp.zeros((max_len, d_model), jnp.float32)
    pe = pe.at[:, 0::2].set(jnp.sin(position * div_term))
    pe = pe.at[:, 1::2].set(jnp.cos(position * div_term))
    params["pe"] = pe

    layers = []
    for li in range(num_layers):
        lk = jax.random.split(keys[2 + li], 4)
        layer = {}
        layer["in_proj_w"], layer["in_proj_b"] = lin(lk[0], d_model, 3 * d_model)
        layer["out_proj_w"], layer["out_proj_b"] = lin(lk[1], d_model, d_model)
        layer["ff1_w"], layer["ff1_b"] = lin(lk[2], d_model, dim_feedforward)
        layer["ff2_w"], layer["ff2_b"] = lin(lk[3], dim_feedforward, d_model)
        layer["ln1_g"] = jnp.ones((d_model,), jnp.float32)
        layer["ln1_b"] = jnp.zeros((d_model,), jnp.float32)
        layer["ln2_g"] = jnp.ones((d_model,), jnp.float32)
        layer["ln2_b"] = jnp.zeros((d_model,), jnp.float32)
        layers.append(layer)
    params["layers"] = layers
    return params


def transformer_classifier_forward(params, src, model_dim, num_heads):
    """src: [B, S, input_dim] -> logits [B, num_classes]."""
    B, S, _ = src.shape
    t_q, t_kv, S_pad = _seq_tiles(S)

    # Pad the sequence once in HBM so every kernel gets (8,128)-friendly tiles.
    if S_pad != S:
        src = jnp.pad(src, ((0, 0), (0, S_pad - S), (0, 0)))
    pe = params["pe"][:S]
    if S_pad != S:
        pe = jnp.pad(pe, ((0, S_pad - S), (0, 0)))

    # input_fc + sqrt(d_model) + positional encoding (dropout = identity in eval)
    h = pallas_input_embed(src, params["in_w"], params["in_b"], pe,
                           math.sqrt(model_dim))

    # transformer encoder stack (post-norm nn.TransformerEncoderLayer, relu)
    for layer in params["layers"]:
        h = pallas_attention_block(h, layer, num_heads, t_q, t_kv, s_valid=S)
        h = pallas_ffn_block(
            h.reshape(B * S_pad, model_dim),
            layer["ff1_w"], layer["ff1_b"], layer["ff2_w"], layer["ff2_b"],
            layer["ln2_g"], layer["ln2_b"]).reshape(B, S_pad, model_dim)

    # mean over the (valid) sequence positions + output_fc
    return pallas_pool_head(h, params["out_w"], params["out_b"], s_valid=S)


# ----------------------------------------------------------------------------
# Pure-JAX reference (for correctness check only)
# ----------------------------------------------------------------------------
def reference_forward(params, src, model_dim, num_heads, eps=1e-5):
    B, S, _ = src.shape
    D, H = model_dim, num_heads
    Dh = D // H

    def ln(y, g, b):
        mu = y.mean(-1, keepdims=True)
        var = ((y - mu) ** 2).mean(-1, keepdims=True)
        return (y - mu) / jnp.sqrt(var + eps) * g + b

    h = src.reshape(B * S, -1) @ params["in_w"] + params["in_b"]
    h = h * math.sqrt(D)
    h = h.reshape(B, S, D) + params["pe"][:S][None]
    for p in params["layers"]:
        x2 = h.reshape(B * S, D)
        qkv = x2 @ p["in_proj_w"] + p["in_proj_b"]
        q, k, v = jnp.split(qkv, 3, axis=-1)
        sh = lambda t: t.reshape(B, S, H, Dh).transpose(0, 2, 1, 3)
        q, k, v = sh(q), sh(k), sh(v)
        s = jnp.einsum("bhqd,bhkd->bhqk", q, k) / math.sqrt(Dh)
        a = jax.nn.softmax(s, axis=-1)
        o = jnp.einsum("bhqk,bhkd->bhqd", a, v).transpose(0, 2, 1, 3).reshape(B * S, D)
        attn_out = o @ p["out_proj_w"] + p["out_proj_b"]
        h1 = ln(x2 + attn_out, p["ln1_g"], p["ln1_b"])
        ff = jnp.maximum(h1 @ p["ff1_w"] + p["ff1_b"], 0.0)
        ff = ff @ p["ff2_w"] + p["ff2_b"]
        h = ln(h1 + ff, p["ln2_g"], p["ln2_b"]).reshape(B, S, D)
    pooled = h.mean(axis=1)
    return pooled @ params["out_w"] + params["out_b"]


# ----------------------------------------------------------------------------
# Demo
# ----------------------------------------------------------------------------
if __name__ == "__main__":
    BATCH = 2
    SEQ = 12          # deliberately not tile-aligned: exercises the pad + mask path
    INPUT_DIM = 16
    MODEL_DIM = 32
    NUM_HEADS = 4
    NUM_LAYERS = 2
    NUM_CLASSES = 5
    DIM_FF = 64
    MAX_LEN = 64      # small stand-in for SEQUENCE_LENGTH=3500 (only pe[:SEQ] is used)

    key = jax.random.PRNGKey(0)
    kx, kp = jax.random.split(key)
    x = jax.random.normal(kx, (BATCH, SEQ, INPUT_DIM), dtype=jnp.float32)
    params = init_params(kp, INPUT_DIM, MODEL_DIM, NUM_HEADS, NUM_LAYERS,
                         NUM_CLASSES, DIM_FF, MAX_LEN)

    fwd = jax.jit(functools.partial(transformer_classifier_forward,
                                    model_dim=MODEL_DIM, num_heads=NUM_HEADS))
    out = jax.block_until_ready(fwd(params, x))

    assert out.shape == (BATCH, NUM_CLASSES)
    assert jnp.all(jnp.isfinite(out))

    ref = jax.block_until_ready(reference_forward(params, x, MODEL_DIM, NUM_HEADS))
    np.testing.assert_allclose(np.asarray(out), np.asarray(ref),
                               rtol=5e-2, atol=5e-3)
    print("KERNEL_OK")
</pallas_src>

<mosaic_0001>
module attributes {stable_mosaic.version = 11 : i64} {
  func.func @_input_embed_kernel(%arg0: i32, %arg1: i32, %arg2: memref<1x16x16xf32, #tpu.memory_space<vmem>>, %arg3: memref<16x32xf32, #tpu.memory_space<vmem>>, %arg4: memref<1x32xf32, #tpu.memory_space<vmem>>, %arg5: memref<16x32xf32, #tpu.memory_space<vmem>>, %arg6: memref<1x16x32xf32, #tpu.memory_space<vmem>>) attributes {dimension_semantics = [#tpu.dimension_semantics<parallel>, #tpu.dimension_semantics<parallel>], iteration_bounds = array<i64: 2, 1>, scalar_prefetch = 0 : i64, scratch_operands = 0 : i64, tpu.core_type = #tpu.core_type<tc>, window_params = [{transform_indices = @transform_0, window_bounds = array<i64: 1, 16, 16>}, {pipeline_mode = #tpu.pipeline_mode<synchronous>, transform_indices = @transform_1, window_bounds = array<i64: 16, 32>}, {pipeline_mode = #tpu.pipeline_mode<synchronous>, transform_indices = @transform_2, window_bounds = array<i64: 1, 32>}, {transform_indices = @transform_3, window_bounds = array<i64: 16, 32>}, {transform_indices = @transform_4, window_bounds = array<i64: 1, 16, 32>}]} {
    %c0 = arith.constant 0 : index
    %c0_0 = arith.constant 0 : index
    %c0_1 = arith.constant 0 : index
    %0 = vector.load %arg2[%c0, %c0_0, %c0_1] : memref<1x16x16xf32, #tpu.memory_space<vmem>>, vector<1x16x16xf32>
    %1 = vector.shape_cast %0 : vector<1x16x16xf32> to vector<16x16xf32>
    %c0_2 = arith.constant 0 : index
    %c0_3 = arith.constant 0 : index
    %2 = vector.load %arg3[%c0_2, %c0_3] : memref<16x32xf32, #tpu.memory_space<vmem>>, vector<16x32xf32>
    %cst = arith.constant dense<0.000000e+00> : vector<16x32xf32>
    %3 = tpu.matmul %1, %2, %cst {dimension_numbers = #tpu.dot_dimension_numbers<[1], [0], [0], [1], [0, 0, 1, 1], [], []>} : vector<16x16xf32>, vector<16x32xf32>, vector<16x32xf32> -> vector<16x32xf32>
    %c0_4 = arith.constant 0 : index
    %c0_5 = arith.constant 0 : index
    %4 = vector.load %arg4[%c0_4, %c0_5] : memref<1x32xf32, #tpu.memory_space<vmem>>, vector<1x32xf32>
    %5 = vector.broadcast %4 : vector<1x32xf32> to vector<16x32xf32>
    %6 = arith.addf %3, %5 : vector<16x32xf32>
    %c0_6 = arith.constant 0 : index
    %c0_7 = arith.constant 0 : index
    %7 = vector.load %arg5[%c0_6, %c0_7] : memref<16x32xf32, #tpu.memory_space<vmem>>, vector<16x32xf32>
    %8 = arith.addf %6, %7 : vector<16x32xf32>
    %c0_8 = arith.constant 0 : index
    %c0_9 = arith.constant 0 : index
    %c0_10 = arith.constant 0 : index
    %9 = vector.load %arg6[%c0_8, %c0_9, %c0_10] : memref<1x16x32xf32, #tpu.memory_space<vmem>>, vector<1x16x32xf32>
    %10 = vector.shape_cast %9 : vector<1x16x32xf32> to vector<16x32xf32>
    %11 = vector.shape_cast %8 : vector<16x32xf32> to vector<1x16x32xf32>
    tpu.vector_store %arg6[%c0_8, %c0_9, %c0_10], %11 {strides = array<i32>} : memref<1x16x32xf32, #tpu.memory_space<vmem>>, vector<1x16x32xf32>,
    return
  }
  func.func @transform_0(%arg0: i32, %arg1: i32) -> (i32, i32, i32) {
    %c0_i32 = arith.constant 0 : i32
    %c0_i32_0 = arith.constant 0 : i32
    return %arg0, %arg1, %c0_i32 : i32, i32, i32
  }
  func.func @transform_1(%arg0: i32, %arg1: i32) -> (i32, i32) {
    %c0_i32 = arith.constant 0 : i32
    %c0_i32_0 = arith.constant 0 : i32
    %c0_i32_1 = arith.constant 0 : i32
    return %c0_i32, %c0_i32_0 : i32, i32
  }
  func.func @transform_2(%arg0: i32, %arg1: i32) -> (i32, i32) {
    %c0_i32 = arith.constant 0 : i32
    %c0_i32_0 = arith.constant 0 : i32
    %c0_i32_1 = arith.constant 0 : i32
    return %c0_i32, %c0_i32_0 : i32, i32
  }
  func.func @transform_3(%arg0: i32, %arg1: i32) -> (i32, i32) {
    %c0_i32 = arith.constant 0 : i32
    %c0_i32_0 = arith.constant 0 : i32
    return %arg1, %c0_i32 : i32, i32
  }
  func.func @transform_4(%arg0: i32, %arg1: i32) -> (i32, i32, i32) {
    %c0_i32 = arith.constant 0 : i32
    %c0_i32_0 = arith.constant 0 : i32
    return %arg0, %arg1, %c0_i32 : i32, i32, i32
  }
}

module attributes {stable_mosaic.version = 11 : i64} {
  func.func @_qkv_proj_kernel(%arg0: i32, %arg1: i32, %arg2: i32, %arg3: memref<1x16x32xf32, #tpu.memory_space<vmem>>, %arg4: memref<1x32x8xf32, #tpu.memory_space<vmem>>, %arg5: memref<1x32x8xf32, #tpu.memory_space<vmem>>, %arg6: memref<1x32x8xf32, #tpu.memory_space<vmem>>, %arg7: memref<1x1x8xf32, #tpu.memory_space<vmem>>, %arg8: memref<1x1x8xf32, #tpu.memory_space<vmem>>, %arg9: memref<1x1x8xf32, #tpu.memory_space<vmem>>, %arg10: memref<1x1x16x8xf32, #tpu.memory_space<vmem>>, %arg11: memref<1x1x16x8xf32, #tpu.memory_space<vmem>>, %arg12: memref<1x1x16x8xf32, #tpu.memory_space<vmem>>) attributes {dimension_semantics = [#tpu.dimension_semantics<parallel>, #tpu.dimension_semantics<parallel>, #tpu.dimension_semantics<parallel>], iteration_bounds = array<i64: 2, 1, 4>, scalar_prefetch = 0 : i64, scratch_operands = 0 : i64, tpu.core_type = #tpu.core_type<tc>, window_params = [{transform_indices = @transform_0, window_bounds = array<i64: 1, 16, 32>}, {transform_indices = @transform_1, window_bounds = array<i64: 1, 32, 8>}, {transform_indices = @transform_2, window_bounds = array<i64: 1, 32, 8>}, {transform_indices = @transform_3, window_bounds = array<i64: 1, 32, 8>}, {transform_indices = @transform_4, window_bounds = array<i64: 1, 1, 8>}, {transform_indices = @transform_5, window_bounds = array<i64: 1, 1, 8>}, {transform_indices = @transform_6, window_bounds = array<i64: 1, 1, 8>}, {transform_indices = @transform_7, window_bounds = array<i64: 1, 1, 16, 8>}, {transform_indices = @transform_8, window_bounds = array<i64: 1, 1, 16, 8>}, {transform_indices = @transform_9, window_bounds = array<i64: 1, 1, 16, 8>}]} {
    %c0 = arith.constant 0 : index
    %c0_0 = arith.constant 0 : index
    %c0_1 = arith.constant 0 : index
    %0 = vector.load %arg3[%c0, %c0_0, %c0_1] : memref<1x16x32xf32, #tpu.memory_space<vmem>>, vector<1x16x32xf32>
    %1 = vector.shape_cast %0 : vector<1x16x32xf32> to vector<16x32xf32>
    %c0_2 = arith.constant 0 : index
    %c0_3 = arith.constant 0 : index
    %c0_4 = arith.constant 0 : index
    %2 = vector.load %arg4[%c0_2, %c0_3, %c0_4] : memref<1x32x8xf32, #tpu.memory_space<vmem>>, vector<1x32x8xf32>
    %3 = vector.shape_cast %2 : vector<1x32x8xf32> to vector<32x8xf32>
    %cst = arith.constant dense<0.000000e+00> : vector<16x8xf32>
    %4 = tpu.matmul %1, %3, %cst {dimension_numbers = #tpu.dot_dimension_numbers<[1], [0], [0], [1], [0, 0, 1, 1], [], []>} : vector<16x32xf32>, vector<32x8xf32>, vector<16x8xf32> -> vector<16x8xf32>
    %c0_5 = arith.constant 0 : index
    %c0_6 = arith.constant 0 : index
    %c0_7 = arith.constant 0 : index
    %5 = vector.load %arg7[%c0_5, %c0_6, %c0_7] : memref<1x1x8xf32, #tpu.memory_space<vmem>>, vector<1x1x8xf32>
    %6 = vector.shape_cast %5 : vector<1x1x8xf32> to vector<1x8xf32>
    %7 = vector.broadcast %6 : vector<1x8xf32> to vector<16x8xf32>
    %8 = arith.addf %4, %7 : vector<16x8xf32>
    %c0_8 = arith.constant 0 : index
    %c0_9 = arith.constant 0 : index
    %c0_10 = arith.constant 0 : index
    %c0_11 = arith.constant 0 : index
    %9 = vector.load %arg10[%c0_8, %c0_9, %c0_10, %c0_11] : memref<1x1x16x8xf32, #tpu.memory_space<vmem>>, vector<1x1x16x8xf32>
    %10 = vector.shape_cast %9 : vector<1x1x16x8xf32> to vector<16x8xf32>
    %11 = vector.shape_cast %8 : vector<16x8xf32> to vector<1x1x16x8xf32>
    tpu.vector_store %arg10[%c0_8, %c0_9, %c0_10, %c0_11], %11 {strides = array<i32>} : memref<1x1x16x8xf32, #tpu.memory_space<vmem>>, vector<1x1x16x8xf32>,
    %c0_12 = arith.constant 0 : index
    %c0_13 = arith.constant 0 : index
    %c0_14 = arith.constant 0 : index
    %12 = vector.load %arg5[%c0_12, %c0_13, %c0_14] : memref<1x32x8xf32, #tpu.memory_space<vmem>>, vector<1x32x8xf32>
    %13 = vector.shape_cast %12 : vector<1x32x8xf32> to vector<32x8xf32>
    %cst_15 = arith.constant dense<0.000000e+00> : vector<16x8xf32>
    %14 = tpu.matmul %1, %13, %cst_15 {dimension_numbers = #tpu.dot_dimension_numbers<[1], [0], [0], [1], [0, 0, 1, 1], [], []>} : vector<16x32xf32>, vector<32x8xf32>, vector<16x8xf32> -> vector<16x8xf32>
    %c0_16 = arith.constant 0 : index
    %c0_17 = arith.constant 0 : index
    %c0_18 = arith.constant 0 : index
    %15 = vector.load %arg8[%c0_16, %c0_17, %c0_18] : memref<1x1x8xf32, #tpu.memory_space<vmem>>, vector<1x1x8xf32>
    %16 = vector.shape_cast %15 : vector<1x1x8xf32> to vector<1x8xf32>
    %17 = vector.broadcast %16 : vector<1x8xf32> to vector<16x8xf32>
    %18 = arith.addf %14, %17 : vector<16x8xf32>
    %c0_19 = arith.constant 0 : index
    %c0_20 = arith.constant 0 : index
    %c0_21 = arith.constant 0 : index
    %c0_22 = arith.constant 0 : index
    %19 = vector.load %arg11[%c0_19, %c0_20, %c0_21, %c0_22] : memref<1x1x16x8xf32, #tpu.memory_space<vmem>>, vector<1x1x16x8xf32>
    %20 = vector.shape_cast %19 : vector<1x1x16x8xf32> to vector<16x8xf32>
    %21 = vector.shape_cast %18 : vector<16x8xf32> to vector<1x1x16x8xf32>
    tpu.vector_store %arg11[%c0_19, %c0_20, %c0_21, %c0_22], %21 {strides = array<i32>} : memref<1x1x16x8xf32, #tpu.memory_space<vmem>>, vector<1x1x16x8xf32>,
    %c0_23 = arith.constant 0 : index
    %c0_24 = arith.constant 0 : index
    %c0_25 = arith.constant 0 : index
    %22 = vector.load %arg6[%c0_23, %c0_24, %c0_25] : memref<1x32x8xf32, #tpu.memory_space<vmem>>, vector<1x32x8xf32>
    %23 = vector.shape_cast %22 : vector<1x32x8xf32> to vector<32x8xf32>
    %cst_26 = arith.constant dense<0.000000e+00> : vector<16x8xf32>
    %24 = tpu.matmul %1, %23, %cst_26 {dimension_numbers = #tpu.dot_dimension_numbers<[1], [0], [0], [1], [0, 0, 1, 1], [], []>} : vector<16x32xf32>, vector<32x8xf32>, vector<16x8xf32> -> vector<16x8xf32>
    %c0_27 = arith.constant 0 : index
    %c0_28 = arith.constant 0 : index
    %c0_29 = arith.constant 0 : index
    %25 = vector.load %arg9[%c0_27, %c0_28, %c0_29] : memref<1x1x8xf32, #tpu.memory_space<vmem>>, vector<1x1x8xf32>
    %26 = vector.shape_cast %25 : vector<1x1x8xf32> to vector<1x8xf32>
    %27 = vector.broadcast %26 : vector<1x8xf32> to vector<16x8xf32>
    %28 = arith.addf %24, %27 : vector<16x8xf32>
    %c0_30 = arith.constant 0 : index
    %c0_31 = arith.constant 0 : index
    %c0_32 = arith.constant 0 : index
    %c0_33 = arith.constant 0 : index
    %29 = vector.load %arg12[%c0_30, %c0_31, %c0_32, %c0_33] : memref<1x1x16x8xf32, #tpu.memory_space<vmem>>, vector<1x1x16x8xf32>
    %30 = vector.shape_cast %29 : vector<1x1x16x8xf32> to vector<16x8xf32>
    %31 = vector.shape_cast %28 : vector<16x8xf32> to vector<1x1x16x8xf32>
    tpu.vector_store %arg12[%c0_30, %c0_31, %c0_32, %c0_33], %31 {strides = array<i32>} : memref<1x1x16x8xf32, #tpu.memory_space<vmem>>, vector<1x1x16x8xf32>,
    return
  }
  func.func @transform_0(%arg0: i32, %arg1: i32, %arg2: i32) -> (i32, i32, i32) {
    %c0_i32 = arith.constant 0 : i32
    %c0_i32_0 = arith.constant 0 : i32
    return %arg0, %arg1, %c0_i32 : i32, i32, i32
  }
  func.func @transform_1(%arg0: i32, %arg1: i32, %arg2: i32) -> (i32, i32, i32) {
    %c0_i32 = arith.constant 0 : i32
    %c0_i32_0 = arith.constant 0 : i32
    %c0_i32_1 = arith.constant 0 : i32
    return %arg2, %c0_i32, %c0_i32_0 : i32, i32, i32
  }
  func.func @transform_2(%arg0: i32, %arg1: i32, %arg2: i32) -> (i32, i32, i32) {
    %c0_i32 = arith.constant 0 : i32
    %c0_i32_0 = arith.constant 0 : i32
    %c0_i32_1 = arith.constant 0 : i32
    return %arg2, %c0_i32, %c0_i32_0 : i32, i32, i32
  }
  func.func @transform_3(%arg0: i32, %arg1: i32, %arg2: i32) -> (i32, i32, i32) {
    %c0_i32 = arith.constant 0 : i32
    %c0_i32_0 = arith.constant 0 : i32
    %c0_i32_1 = arith.constant 0 : i32
    return %arg2, %c0_i32, %c0_i32_0 : i32, i32, i32
  }
  func.func @transform_4(%arg0: i32, %arg1: i32, %arg2: i32) -> (i32, i32, i32) {
    %c0_i32 = arith.constant 0 : i32
    %c0_i32_0 = arith.constant 0 : i32
    %c0_i32_1 = arith.constant 0 : i32
    return %arg2, %c0_i32, %c0_i32_0 : i32, i32, i32
  }
  func.func @transform_5(%arg0: i32, %arg1: i32, %arg2: i32) -> (i32, i32, i32) {
    %c0_i32 = arith.constant 0 : i32
    %c0_i32_0 = arith.constant 0 : i32
    %c0_i32_1 = arith.constant 0 : i32
    return %arg2, %c0_i32, %c0_i32_0 : i32, i32, i32
  }
  func.func @transform_6(%arg0: i32, %arg1: i32, %arg2: i32) -> (i32, i32, i32) {
    %c0_i32 = arith.constant 0 : i32
    %c0_i32_0 = arith.constant 0 : i32
    %c0_i32_1 = arith.constant 0 : i32
    return %arg2, %c0_i32, %c0_i32_0 : i32, i32, i32
  }
  func.func @transform_7(%arg0: i32, %arg1: i32, %arg2: i32) -> (i32, i32, i32, i32) {
    %c0_i32 = arith.constant 0 : i32
    %c0_i32_0 = arith.constant 0 : i32
    return %arg0, %arg2, %arg1, %c0_i32 : i32, i32, i32, i32
  }
  func.func @transform_8(%arg0: i32, %arg1: i32, %arg2: i32) -> (i32, i32, i32, i32) {
    %c0_i32 = arith.constant 0 : i32
    %c0_i32_0 = arith.constant 0 : i32
    return %arg0, %arg2, %arg1, %c0_i32 : i32, i32, i32, i32
  }
  func.func @transform_9(%arg0: i32, %arg1: i32, %arg2: i32) -> (i32, i32, i32, i32) {
    %c0_i32 = arith.constant 0 : i32
    %c0_i32_0 = arith.constant 0 : i32
    return %arg0, %arg2, %arg1, %c0_i32 : i32, i32, i32, i32
  }
}

module attributes {stable_mosaic.version = 11 : i64} {
  func.func @_flash_kernel(%arg0: i32, %arg1: i32, %arg2: i32, %arg3: i32, %arg4: memref<1x1x16x8xf32, #tpu.memory_space<vmem>>, %arg5: memref<1x1x16x8xf32, #tpu.memory_space<vmem>>, %arg6: memref<1x1x16x8xf32, #tpu.memory_space<vmem>>, %arg7: memref<1x1x16x8xf32, #tpu.memory_space<vmem>>, %arg8: memref<16x1xf32, #tpu.memory_space<vmem>>, %arg9: memref<16x1xf32, #tpu.memory_space<vmem>>, %arg10: memref<16x8xf32, #tpu.memory_space<vmem>>) attributes {dimension_semantics = [#tpu.dimension_semantics<parallel>, #tpu.dimension_semantics<parallel>, #tpu.dimension_semantics<parallel>, #tpu.dimension_semantics<arbitrary>], iteration_bounds = array<i64: 2, 4, 1, 1>, scalar_prefetch = 0 : i64, scratch_operands = 3 : i64, tpu.core_type = #tpu.core_type<tc>, window_params = [{transform_indices = @transform_0, window_bounds = array<i64: 1, 1, 16, 8>}, {transform_indices = @transform_1, window_bounds = array<i64: 1, 1, 16, 8>}, {transform_indices = @transform_2, window_bounds = array<i64: 1, 1, 16, 8>}, {transform_indices = @transform_3, window_bounds = array<i64: 1, 1, 16, 8>}]} {
    %c0_i32 = arith.constant 0 : i32
    %0 = arith.cmpi eq, %arg3, %c0_i32 : i32
    %1 = arith.extui %0 : i1 to i32
    %c0_i32_0 = arith.constant 0 : i32
    %2 = arith.cmpi ne, %1, %c0_i32_0 : i32
    scf.if %2 {
      %cst_30 = arith.constant 0xFF800000 : f32
      %43 = vector.broadcast %cst_30 : f32 to vector<16x1xf32>
      %c0_31 = arith.constant 0 : index
      %c0_32 = arith.constant 0 : index
      %44 = vector.load %arg8[%c0_31, %c0_32] : memref<16x1xf32, #tpu.memory_space<vmem>>, vector<16x1xf32>
      tpu.vector_store %arg8[%c0_31, %c0_32], %43 {strides = array<i32>} : memref<16x1xf32, #tpu.memory_space<vmem>>, vector<16x1xf32>,
      %cst_33 = arith.constant 0.000000e+00 : f32
      %45 = vector.broadcast %cst_33 : f32 to vector<16x1xf32>
      %c0_34 = arith.constant 0 : index
      %c0_35 = arith.constant 0 : index
      %46 = vector.load %arg9[%c0_34, %c0_35] : memref<16x1xf32, #tpu.memory_space<vmem>>, vector<16x1xf32>
      tpu.vector_store %arg9[%c0_34, %c0_35], %45 {strides = array<i32>} : memref<16x1xf32, #tpu.memory_space<vmem>>, vector<16x1xf32>,
      %cst_36 = arith.constant 0.000000e+00 : f32
      %47 = vector.broadcast %cst_36 : f32 to vector<16x8xf32>
      %c0_37 = arith.constant 0 : index
      %c0_38 = arith.constant 0 : index
      %48 = vector.load %arg10[%c0_37, %c0_38] : memref<16x8xf32, #tpu.memory_space<vmem>>, vector<16x8xf32>
      tpu.vector_store %arg10[%c0_37, %c0_38], %47 {strides = array<i32>} : memref<16x8xf32, #tpu.memory_space<vmem>>, vector<16x8xf32>,
    } else {
    }
    %c0 = arith.constant 0 : index
    %c0_1 = arith.constant 0 : index
    %c0_2 = arith.constant 0 : index
    %c0_3 = arith.constant 0 : index
    %3 = vector.load %arg4[%c0, %c0_1, %c0_2, %c0_3] : memref<1x1x16x8xf32, #tpu.memory_space<vmem>>, vector<1x1x16x8xf32>
    %4 = vector.shape_cast %3 : vector<1x1x16x8xf32> to vector<16x8xf32>
    %c0_4 = arith.constant 0 : index
    %c0_5 = arith.constant 0 : index
    %c0_6 = arith.constant 0 : index
    %c0_7 = arith.constant 0 : index
    %5 = vector.load %arg5[%c0_4, %c0_5, %c0_6, %c0_7] : memref<1x1x16x8xf32, #tpu.memory_space<vmem>>, vector<1x1x16x8xf32>
    %6 = vector.shape_cast %5 : vector<1x1x16x8xf32> to vector<16x8xf32>
    %c0_8 = arith.constant 0 : index
    %c0_9 = arith.constant 0 : index
    %c0_10 = arith.constant 0 : index
    %c0_11 = arith.constant 0 : index
    %7 = vector.load %arg6[%c0_8, %c0_9, %c0_10, %c0_11] : memref<1x1x16x8xf32, #tpu.memory_space<vmem>>, vector<1x1x16x8xf32>
    %8 = vector.shape_cast %7 : vector<1x1x16x8xf32> to vector<16x8xf32>
    %cst = arith.constant dense<0.000000e+00> : vector<16x16xf32>
    %9 = tpu.matmul %4, %6, %cst {dimension_numbers = #tpu.dot_dimension_numbers<[1], [1], [0], [0], [0, 0, 1, 0], [], []>} : vector<16x8xf32>, vector<16x8xf32>, vector<16x16xf32> -> vector<16x16xf32>
    %c16_i32 = arith.constant 16 : i32
    %10 = arith.muli %arg3, %c16_i32 : i32
    %11 = tpu.iota {dimensions = array<i32: 1>} : vector<16x16xi32>
    %12 = vector.broadcast %10 : i32 to vector<16x16xi32>
    %13 = arith.addi %12, %11 : vector<16x16xi32>
    %c12_i32 = arith.constant 12 : i32
    %14 = vector.broadcast %c12_i32 : i32 to vector<16x16xi32>
    %15 = arith.cmpi slt, %13, %14 : vector<16x16xi32>
    %cst_12 = arith.constant 0xFF800000 : f32
    %16 = vector.broadcast %cst_12 : f32 to vector<16x16xf32>
    %17 = arith.select %15, %9, %16 : vector<16x16xi1>, vector<16x16xf32>
    %c0_13 = arith.constant 0 : index
    %c0_14 = arith.constant 0 : index
    %18 = vector.load %arg8[%c0_13, %c0_14] : memref<16x1xf32, #tpu.memory_space<vmem>>, vector<16x1xf32>
    %cst_15 = arith.constant dense<0xFF800000> : vector<16xf32>
    %19 = vector.multi_reduction <maximumf>, %17, %cst_15 [1] : vector<16x16xf32> to vector<16xf32>
    %20 = vector.shape_cast %19 : vector<16xf32> to vector<16x1xf32>
    %21 = arith.maximumf %18, %20 : vector<16x1xf32>
    %22 = arith.subf %18, %21 : vector<16x1xf32>
    %23 = math.exp %22 : vector<16x1xf32>
    %24 = vector.broadcast %21 : vector<16x1xf32> to vector<16x16xf32>
    %25 = arith.subf %17, %24 : vector<16x16xf32>
    %26 = math.exp %25 : vector<16x16xf32>
    %c0_16 = arith.constant 0 : index
    %c0_17 = arith.constant 0 : index
    %27 = vector.load %arg9[%c0_16, %c0_17] : memref<16x1xf32, #tpu.memory_space<vmem>>, vector<16x1xf32>
    %28 = arith.mulf %23, %27 : vector<16x1xf32>
    %cst_18 = arith.constant dense<0.000000e+00> : vector<16xf32>
    %29 = vector.multi_reduction <add>, %26, %cst_18 [1] : vector<16x16xf32> to vector<16xf32>
    %30 = vector.shape_cast %29 : vector<16xf32> to vector<16x1xf32>
    %31 = arith.addf %28, %30 : vector<16x1xf32>
    %c0_19 = arith.constant 0 : index
    %c0_20 = arith.constant 0 : index
    %32 = vector.load %arg9[%c0_19, %c0_20] : memref<16x1xf32, #tpu.memory_space<vmem>>, vector<16x1xf32>
    tpu.vector_store %arg9[%c0_19, %c0_20], %31 {strides = array<i32>} : memref<16x1xf32, #tpu.memory_space<vmem>>, vector<16x1xf32>,
    %c0_21 = arith.constant 0 : index
    %c0_22 = arith.constant 0 : index
    %33 = vector.load %arg10[%c0_21, %c0_22] : memref<16x8xf32, #tpu.memory_space<vmem>>, vector<16x8xf32>
    %34 = vector.broadcast %23 : vector<16x1xf32> to vector<16x8xf32>
    %35 = arith.mulf %34, %33 : vector<16x8xf32>
    %cst_23 = arith.constant dense<0.000000e+00> : vector<16x8xf32>
    %36 = tpu.matmul %26, %8, %cst_23 {dimension_numbers = #tpu.dot_dimension_numbers<[1], [0], [0], [1], [0, 0, 1, 1], [], []>} : vector<16x16xf32>, vector<16x8xf32>, vector<16x8xf32> -> vector<16x8xf32>
    %37 = arith.addf %35, %36 : vector<16x8xf32>
    %c0_24 = arith.constant 0 : index
    %c0_25 = arith.constant 0 : index
    %38 = vector.load %arg10[%c0_24, %c0_25] : memref<16x8xf32, #tpu.memory_space<vmem>>, vector<16x8xf32>
    tpu.vector_store %arg10[%c0_24, %c0_25], %37 {strides = array<i32>} : memref<16x8xf32, #tpu.memory_space<vmem>>, vector<16x8xf32>,
    %c0_26 = arith.constant 0 : index
    %c0_27 = arith.constant 0 : index
    %39 = vector.load %arg8[%c0_26, %c0_27] : memref<16x1xf32, #tpu.memory_space<vmem>>, vector<16x1xf32>
    tpu.vector_store %arg8[%c0_26, %c0_27], %21 {strides = array<i32>} : memref<16x1xf32, #tpu.memory_space<vmem>>, vector<16x1xf32>,
    %c0_i32_28 = arith.constant 0 : i32
    %40 = arith.cmpi eq, %arg3, %c0_i32_28 : i32
    %41 = arith.extui %40 : i1 to i32
    %c0_i32_29 = arith.constant 0 : i32
    %42 = arith.cmpi ne, %41, %c0_i32_29 : i32
    scf.if %42 {
      %c0_30 = arith.constant 0 : index
      %c0_31 = arith.constant 0 : index
      %43 = vector.load %arg10[%c0_30, %c0_31] : memref<16x8xf32, #tpu.memory_space<vmem>>, vector<16x8xf32>
      %c0_32 = arith.constant 0 : index
      %c0_33 = arith.constant 0 : index
      %44 = vector.load %arg9[%c0_32, %c0_33] : memref<16x1xf32, #tpu.memory_space<vmem>>, vector<16x1xf32>
      %45 = tpu.reciprocal %44 {approx = true} : vector<16x1xf32> -> vector<16x1xf32>
      %46 = vector.broadcast %45 : vector<16x1xf32> to vector<16x8xf32>
      %47 = arith.mulf %43, %46 : vector<16x8xf32>
      %c0_34 = arith.constant 0 : index
      %c0_35 = arith.constant 0 : index
      %c0_36 = arith.constant 0 : index
      %c0_37 = arith.constant 0 : index
      %48 = vector.load %arg7[%c0_34, %c0_35, %c0_36, %c0_37] : memref<1x1x16x8xf32, #tpu.memory_space<vmem>>, vector<1x1x16x8xf32>
      %49 = vector.shape_cast %48 : vector<1x1x16x8xf32> to vector<16x8xf32>
      %50 = vector.shape_cast %47 : vector<16x8xf32> to vector<1x1x16x8xf32>
      tpu.vector_store %arg7[%c0_34, %c0_35, %c0_36, %c0_37], %50 {strides = array<i32>} : memref<1x1x16x8xf32, #tpu.memory_space<vmem>>, vector<1x1x16x8xf32>,
    } else {
    }
    return
  }
  func.func @transform_0(%arg0: i32, %arg1: i32, %arg2: i32, %arg3: i32) -> (i32, i32, i32, i32) {
    %c0_i32 = arith.constant 0 : i32
    %c0_i32_0 = arith.constant 0 : i32
    return %arg0, %arg1, %arg2, %c0_i32 : i32, i32, i32, i32
  }
  func.func @transform_1(%arg0: i32, %arg1: i32, %arg2: i32, %arg3: i32) -> (i32, i32, i32, i32) {
    %c0_i32 = arith.constant 0 : i32
    %c0_i32_0 = arith.constant 0 : i32
    return %arg0, %arg1, %arg3, %c0_i32 : i32, i32, i32, i32
  }
  func.func @transform_2(%arg0: i32, %arg1: i32, %arg2: i32, %arg3: i32) -> (i32, i32, i32, i32) {
    %c0_i32 = arith.constant 0 : i32
    %c0_i32_0 = arith.constant 0 : i32
    return %arg0, %arg1, %arg3, %c0_i32 : i32, i32, i32, i32
  }
  func.func @transform_3(%arg0: i32, %arg1: i32, %arg2: i32, %arg3: i32) -> (i32, i32, i32, i32) {
    %c0_i32 = arith.constant 0 : i32
    %c0_i32_0 = arith.constant 0 : i32
    return %arg0, %arg1, %arg2, %c0_i32 : i32, i32, i32, i32
  }
}

module attributes {stable_mosaic.version = 11 : i64} {
  func.func @_attn_out_ln_kernel(%arg0: i32, %arg1: i32, %arg2: memref<1x4x16x8xf32, #tpu.memory_space<vmem>>, %arg3: memref<4x8x32xf32, #tpu.memory_space<vmem>>, %arg4: memref<1x32xf32, #tpu.memory_space<vmem>>, %arg5: memref<1x16x32xf32, #tpu.memory_space<vmem>>, %arg6: memref<1x32xf32, #tpu.memory_space<vmem>>, %arg7: memref<1x32xf32, #tpu.memory_space<vmem>>, %arg8: memref<1x16x32xf32, #tpu.memory_space<vmem>>) attributes {dimension_semantics = [#tpu.dimension_semantics<parallel>, #tpu.dimension_semantics<parallel>], iteration_bounds = array<i64: 2, 1>, scalar_prefetch = 0 : i64, scratch_operands = 0 : i64, tpu.core_type = #tpu.core_type<tc>, window_params = [{transform_indices = @transform_0, window_bounds = array<i64: 1, 4, 16, 8>}, {pipeline_mode = #tpu.pipeline_mode<synchronous>, transform_indices = @transform_1, window_bounds = array<i64: 4, 8, 32>}, {pipeline_mode = #tpu.pipeline_mode<synchronous>, transform_indices = @transform_2, window_bounds = array<i64: 1, 32>}, {transform_indices = @transform_3, window_bounds = array<i64: 1, 16, 32>}, {pipeline_mode = #tpu.pipeline_mode<synchronous>, transform_indices = @transform_4, window_bounds = array<i64: 1, 32>}, {pipeline_mode = #tpu.pipeline_mode<synchronous>, transform_indices = @transform_5, window_bounds = array<i64: 1, 32>}, {transform_indices = @transform_6, window_bounds = array<i64: 1, 16, 32>}]} {
    %c0 = arith.constant 0 : index
    %c0_0 = arith.constant 0 : index
    %c0_1 = arith.constant 0 : index
    %0 = vector.load %arg5[%c0, %c0_0, %c0_1] : memref<1x16x32xf32, #tpu.memory_space<vmem>>, vector<1x16x32xf32>
    %1 = vector.shape_cast %0 : vector<1x16x32xf32> to vector<16x32xf32>
    %c0_2 = arith.constant 0 : index
    %c0_3 = arith.constant 0 : index
    %c0_4 = arith.constant 0 : index
    %c0_5 = arith.constant 0 : index
    %2 = vector.load %arg2[%c0_2, %c0_3, %c0_4, %c0_5] : memref<1x4x16x8xf32, #tpu.memory_space<vmem>>, vector<1x1x16x8xf32>
    %3 = vector.shape_cast %2 : vector<1x1x16x8xf32> to vector<16x8xf32>
    %c0_6 = arith.constant 0 : index
    %c0_7 = arith.constant 0 : index
    %c0_8 = arith.constant 0 : index
    %4 = vector.load %arg3[%c0_6, %c0_7, %c0_8] : memref<4x8x32xf32, #tpu.memory_space<vmem>>, vector<1x8x32xf32>
    %5 = vector.shape_cast %4 : vector<1x8x32xf32> to vector<8x32xf32>
    %cst = arith.constant dense<0.000000e+00> : vector<16x32xf32>
    %6 = tpu.matmul %3, %5, %cst {dimension_numbers = #tpu.dot_dimension_numbers<[1], [0], [0], [1], [0, 0, 1, 1], [], []>} : vector<16x8xf32>, vector<8x32xf32>, vector<16x32xf32> -> vector<16x32xf32>
    %c0_9 = arith.constant 0 : index
    %c1 = arith.constant 1 : index
    %c0_10 = arith.constant 0 : index
    %c0_11 = arith.constant 0 : index
    %7 = vector.load %arg2[%c0_9, %c1, %c0_10, %c0_11] : memref<1x4x16x8xf32, #tpu.memory_space<vmem>>, vector<1x1x16x8xf32>
    %8 = vector.shape_cast %7 : vector<1x1x16x8xf32> to vector<16x8xf32>
    %c1_12 = arith.constant 1 : index
    %c0_13 = arith.constant 0 : index
    %c0_14 = arith.constant 0 : index
    %9 = vector.load %arg3[%c1_12, %c0_13, %c0_14] : memref<4x8x32xf32, #tpu.memory_space<vmem>>, vector<1x8x32xf32>
    %10 = vector.shape_cast %9 : vector<1x8x32xf32> to vector<8x32xf32>
    %cst_15 = arith.constant dense<0.000000e+00> : vector<16x32xf32>
    %11 = tpu.matmul %8, %10, %cst_15 {dimension_numbers = #tpu.dot_dimension_numbers<[1], [0], [0], [1], [0, 0, 1, 1], [], []>} : vector<16x8xf32>, vector<8x32xf32>, vector<16x32xf32> -> vector<16x32xf32>
    %12 = arith.addf %6, %11 : vector<16x32xf32>
    %c0_16 = arith.constant 0 : index
    %c2 = arith.constant 2 : index
    %c0_17 = arith.constant 0 : index
    %c0_18 = arith.constant 0 : index
    %13 = vector.load %arg2[%c0_16, %c2, %c0_17, %c0_18] : memref<1x4x16x8xf32, #tpu.memory_space<vmem>>, vector<1x1x16x8xf32>
    %14 = vector.shape_cast %13 : vector<1x1x16x8xf32> to vector<16x8xf32>
    %c2_19 = arith.constant 2 : index
    %c0_20 = arith.constant 0 : index
    %c0_21 = arith.constant 0 : index
    %15 = vector.load %arg3[%c2_19, %c0_20, %c0_21] : memref<4x8x32xf32, #tpu.memory_space<vmem>>, vector<1x8x32xf32>
    %16 = vector.shape_cast %15 : vector<1x8x32xf32> to vector<8x32xf32>
    %cst_22 = arith.constant dense<0.000000e+00> : vector<16x32xf32>
    %17 = tpu.matmul %14, %16, %cst_22 {dimension_numbers = #tpu.dot_dimension_numbers<[1], [0], [0], [1], [0, 0, 1, 1], [], []>} : vector<16x8xf32>, vector<8x32xf32>, vector<16x32xf32> -> vector<16x32xf32>
    %18 = arith.addf %12, %17 : vector<16x32xf32>
    %c0_23 = arith.constant 0 : index
    %c3 = arith.constant 3 : index
    %c0_24 = arith.constant 0 : index
    %c0_25 = arith.constant 0 : index
    %19 = vector.load %arg2[%c0_23, %c3, %c0_24, %c0_25] : memref<1x4x16x8xf32, #tpu.memory_space<vmem>>, vector<1x1x16x8xf32>
    %20 = vector.shape_cast %19 : vector<1x1x16x8xf32> to vector<16x8xf32>
    %c3_26 = arith.constant 3 : index
    %c0_27 = arith.constant 0 : index
    %c0_28 = arith.constant 0 : index
    %21 = vector.load %arg3[%c3_26, %c0_27, %c0_28] : memref<4x8x32xf32, #tpu.memory_space<vmem>>, vector<1x8x32xf32>
    %22 = vector.shape_cast %21 : vector<1x8x32xf32> to vector<8x32xf32>
    %cst_29 = arith.constant dense<0.000000e+00> : vector<16x32xf32>
    %23 = tpu.matmul %20, %22, %cst_29 {dimension_numbers = #tpu.dot_dimension_numbers<[1], [0], [0], [1], [0, 0, 1, 1], [], []>} : vector<16x8xf32>, vector<8x32xf32>, vector<16x32xf32> -> vector<16x32xf32>
    %24 = arith.addf %18, %23 : vector<16x32xf32>
    %25 = arith.addf %1, %24 : vector<16x32xf32>
    %c0_30 = arith.constant 0 : index
    %c0_31 = arith.constant 0 : index
    %26 = vector.load %arg4[%c0_30, %c0_31] : memref<1x32xf32, #tpu.memory_space<vmem>>, vector<1x32xf32>
    %27 = vector.broadcast %26 : vector<1x32xf32> to vector<16x32xf32>
    %28 = arith.addf %25, %27 : vector<16x32xf32>
    %cst_32 = arith.constant dense<0.000000e+00> : vector<16xf32>
    %29 = vector.multi_reduction <add>, %28, %cst_32 [1] : vector<16x32xf32> to vector<16xf32>
    %30 = vector.shape_cast %29 : vector<16xf32> to vector<16x1xf32>
    %cst_33 = arith.constant 3.200000e+01 : f32
    %31 = vector.broadcast %cst_33 : f32 to vector<16x1xf32>
    %32 = arith.divf %30, %31 : vector<16x1xf32>
    %33 = vector.broadcast %32 : vector<16x1xf32> to vector<16x32xf32>
    %34 = arith.subf %28, %33 : vector<16x32xf32>
    %35 = arith.mulf %34, %34 : vector<16x32xf32>
    %cst_34 = arith.constant dense<0.000000e+00> : vector<16xf32>
    %36 = vector.multi_reduction <add>, %35, %cst_34 [1] : vector<16x32xf32> to vector<16xf32>
    %37 = vector.shape_cast %36 : vector<16xf32> to vector<16x1xf32>
    %cst_35 = arith.constant 3.200000e+01 : f32
    %38 = vector.broadcast %cst_35 : f32 to vector<16x1xf32>
    %39 = arith.divf %37, %38 : vector<16x1xf32>
    %40 = vector.broadcast %32 : vector<16x1xf32> to vector<16x32xf32>
    %41 = arith.subf %28, %40 : vector<16x32xf32>
    %cst_36 = arith.constant 9.99999974E-6 : f32
    %42 = vector.broadcast %cst_36 : f32 to vector<16x1xf32>
    %43 = arith.addf %39, %42 : vector<16x1xf32>
    %44 = math.rsqrt %43 : vector<16x1xf32>
    %45 = vector.broadcast %44 : vector<16x1xf32> to vector<16x32xf32>
    %46 = arith.mulf %41, %45 : vector<16x32xf32>
    %c0_37 = arith.constant 0 : index
    %c0_38 = arith.constant 0 : index
    %47 = vector.load %arg6[%c0_37, %c0_38] : memref<1x32xf32, #tpu.memory_space<vmem>>, vector<1x32xf32>
    %48 = vector.broadcast %47 : vector<1x32xf32> to vector<16x32xf32>
    %49 = arith.mulf %46, %48 : vector<16x32xf32>
    %c0_39 = arith.constant 0 : index
    %c0_40 = arith.constant 0 : index
    %50 = vector.load %arg7[%c0_39, %c0_40] : memref<1x32xf32, #tpu.memory_space<vmem>>, vector<1x32xf32>
    %51 = vector.broadcast %50 : vector<1x32xf32> to vector<16x32xf32>
    %52 = arith.addf %49, %51 : vector<16x32xf32>
    %c0_41 = arith.constant 0 : index
    %c0_42 = arith.constant 0 : index
    %c0_43 = arith.constant 0 : index
    %53 = vector.load %arg8[%c0_41, %c0_42, %c0_43] : memref<1x16x32xf32, #tpu.memory_space<vmem>>, vector<1x16x32xf32>
    %54 = vector.shape_cast %53 : vector<1x16x32xf32> to vector<16x32xf32>
    %55 = vector.shape_cast %52 : vector<16x32xf32> to vector<1x16x32xf32>
    tpu.vector_store %arg8[%c0_41, %c0_42, %c0_43], %55 {strides = array<i32>} : memref<1x16x32xf32, #tpu.memory_space<vmem>>, vector<1x16x32xf32>,
    return
  }
  func.func @transform_0(%arg0: i32, %arg1: i32) -> (i32, i32, i32, i32) {
    %c0_i32 = arith.constant 0 : i32
    %c0_i32_0 = arith.constant 0 : i32
    %c0_i32_1 = arith.constant 0 : i32
    return %arg0, %c0_i32, %arg1, %c0_i32_0 : i32, i32, i32, i32
  }
  func.func @transform_1(%arg0: i32, %arg1: i32) -> (i32, i32, i32) {
    %c0_i32 = arith.constant 0 : i32
    %c0_i32_0 = arith.constant 0 : i32
    %c0_i32_1 = arith.constant 0 : i32
    %c0_i32_2 = arith.constant 0 : i32
    return %c0_i32, %c0_i32_0, %c0_i32_1 : i32, i32, i32
  }
  func.func @transform_2(%arg0: i32, %arg1: i32) -> (i32, i32) {
    %c0_i32 = arith.constant 0 : i32
    %c0_i32_0 = arith.constant 0 : i32
    %c0_i32_1 = arith.constant 0 : i32
    return %c0_i32, %c0_i32_0 : i32, i32
  }
  func.func @transform_3(%arg0: i32, %arg1: i32) -> (i32, i32, i32) {
    %c0_i32 = arith.constant 0 : i32
    %c0_i32_0 = arith.constant 0 : i32
    return %arg0, %arg1, %c0_i32 : i32, i32, i32
  }
  func.func @transform_4(%arg0: i32, %arg1: i32) -> (i32, i32) {
    %c0_i32 = arith.constant 0 : i32
    %c0_i32_0 = arith.constant 0 : i32
    %c0_i32_1 = arith.constant 0 : i32
    return %c0_i32, %c0_i32_0 : i32, i32
  }
  func.func @transform_5(%arg0: i32, %arg1: i32) -> (i32, i32) {
    %c0_i32 = arith.constant 0 : i32
    %c0_i32_0 = arith.constant 0 : i32
    %c0_i32_1 = arith.constant 0 : i32
    return %c0_i32, %c0_i32_0 : i32, i32
  }
  func.func @transform_6(%arg0: i32, %arg1: i32) -> (i32, i32, i32) {
    %c0_i32 = arith.constant 0 : i32
    %c0_i32_0 = arith.constant 0 : i32
    return %arg0, %arg1, %c0_i32 : i32, i32, i32
  }
}

module attributes {stable_mosaic.version = 11 : i64} {
  func.func @_ffn_block_kernel(%arg0: i32, %arg1: memref<32x32xf32, #tpu.memory_space<vmem>>, %arg2: memref<32x64xf32, #tpu.memory_space<vmem>>, %arg3: memref<1x64xf32, #tpu.memory_space<vmem>>, %arg4: memref<64x32xf32, #tpu.memory_space<vmem>>, %arg5: memref<1x32xf32, #tpu.memory_space<vmem>>, %arg6: memref<1x32xf32, #tpu.memory_space<vmem>>, %arg7: memref<1x32xf32, #tpu.memory_space<vmem>>, %arg8: memref<32x32xf32, #tpu.memory_space<vmem>>) attributes {dimension_semantics = [#tpu.dimension_semantics<parallel>], iteration_bounds = array<i64: 1>, scalar_prefetch = 0 : i64, scratch_operands = 0 : i64, tpu.core_type = #tpu.core_type<tc>, window_params = [{transform_indices = @transform_0, window_bounds = array<i64: 32, 32>}, {pipeline_mode = #tpu.pipeline_mode<synchronous>, transform_indices = @transform_1, window_bounds = array<i64: 32, 64>}, {pipeline_mode = #tpu.pipeline_mode<synchronous>, transform_indices = @transform_2, window_bounds = array<i64: 1, 64>}, {pipeline_mode = #tpu.pipeline_mode<synchronous>, transform_indices = @transform_3, window_bounds = array<i64: 64, 32>}, {pipeline_mode = #tpu.pipeline_mode<synchronous>, transform_indices = @transform_4, window_bounds = array<i64: 1, 32>}, {pipeline_mode = #tpu.pipeline_mode<synchronous>, transform_indices = @transform_5, window_bounds = array<i64: 1, 32>}, {pipeline_mode = #tpu.pipeline_mode<synchronous>, transform_indices = @transform_6, window_bounds = array<i64: 1, 32>}, {transform_indices = @transform_7, window_bounds = array<i64: 32, 32>}]} {
    %c0 = arith.constant 0 : index
    %c0_0 = arith.constant 0 : index
    %0 = vector.load %arg1[%c0, %c0_0] : memref<32x32xf32, #tpu.memory_space<vmem>>, vector<32x32xf32>
    %c0_1 = arith.constant 0 : index
    %c0_2 = arith.constant 0 : index
    %1 = vector.load %arg2[%c0_1, %c0_2] : memref<32x64xf32, #tpu.memory_space<vmem>>, vector<32x64xf32>
    %cst = arith.constant dense<0.000000e+00> : vector<32x64xf32>
    %2 = tpu.matmul %0, %1, %cst {dimension_numbers = #tpu.dot_dimension_numbers<[1], [0], [0], [1], [0, 0, 1, 1], [], []>} : vector<32x32xf32>, vector<32x64xf32>, vector<32x64xf32> -> vector<32x64xf32>
    %c0_3 = arith.constant 0 : index
    %c0_4 = arith.constant 0 : index
    %3 = vector.load %arg3[%c0_3, %c0_4] : memref<1x64xf32, #tpu.memory_space<vmem>>, vector<1x64xf32>
    %4 = vector.broadcast %3 : vector<1x64xf32> to vector<32x64xf32>
    %5 = arith.addf %2, %4 : vector<32x64xf32>
    %cst_5 = arith.constant 0.000000e+00 : f32
    %6 = vector.broadcast %cst_5 : f32 to vector<32x64xf32>
    %7 = arith.maximumf %5, %6 : vector<32x64xf32>
    %c0_6 = arith.constant 0 : index
    %c0_7 = arith.constant 0 : index
    %8 = vector.load %arg4[%c0_6, %c0_7] : memref<64x32xf32, #tpu.memory_space<vmem>>, vector<64x32xf32>
    %cst_8 = arith.constant dense<0.000000e+00> : vector<32x32xf32>
    %9 = tpu.matmul %7, %8, %cst_8 {dimension_numbers = #tpu.dot_dimension_numbers<[1], [0], [0], [1], [0, 0, 1, 1], [], []>} : vector<32x64xf32>, vector<64x32xf32>, vector<32x32xf32> -> vector<32x32xf32>
    %10 = arith.addf %0, %9 : vector<32x32xf32>
    %c0_9 = arith.constant 0 : index
    %c0_10 = arith.constant 0 : index
    %11 = vector.load %arg5[%c0_9, %c0_10] : memref<1x32xf32, #tpu.memory_space<vmem>>, vector<1x32xf32>
    %12 = vector.broadcast %11 : vector<1x32xf32> to vector<32x32xf32>
    %13 = arith.addf %10, %12 : vector<32x32xf32>
    %cst_11 = arith.constant dense<0.000000e+00> : vector<32xf32>
    %14 = vector.multi_reduction <add>, %13, %cst_11 [1] : vector<32x32xf32> to vector<32xf32>
    %15 = vector.shape_cast %14 : vector<32xf32> to vector<32x1xf32>
    %cst_12 = arith.constant 3.200000e+01 : f32
    %16 = vector.broadcast %cst_12 : f32 to vector<32x1xf32>
    %17 = arith.divf %15, %16 : vector<32x1xf32>
    %18 = vector.broadcast %17 : vector<32x1xf32> to vector<32x32xf32>
    %19 = arith.subf %13, %18 : vector<32x32xf32>
    %20 = arith.mulf %19, %19 : vector<32x32xf32>
    %cst_13 = arith.constant dense<0.000000e+00> : vector<32xf32>
    %21 = vector.multi_reduction <add>, %20, %cst_13 [1] : vector<32x32xf32> to vector<32xf32>
    %22 = vector.shape_cast %21 : vector<32xf32> to vector<32x1xf32>
    %cst_14 = arith.constant 3.200000e+01 : f32
    %23 = vector.broadcast %cst_14 : f32 to vector<32x1xf32>
    %24 = arith.divf %22, %23 : vector<32x1xf32>
    %25 = vector.broadcast %17 : vector<32x1xf32> to vector<32x32xf32>
    %26 = arith.subf %13, %25 : vector<32x32xf32>
    %cst_15 = arith.constant 9.99999974E-6 : f32
    %27 = vector.broadcast %cst_15 : f32 to vector<32x1xf32>
    %28 = arith.addf %24, %27 : vector<32x1xf32>
    %29 = math.rsqrt %28 : vector<32x1xf32>
    %30 = vector.broadcast %29 : vector<32x1xf32> to vector<32x32xf32>
    %31 = arith.mulf %26, %30 : vector<32x32xf32>
    %c0_16 = arith.constant 0 : index
    %c0_17 = arith.constant 0 : index
    %32 = vector.load %arg6[%c0_16, %c0_17] : memref<1x32xf32, #tpu.memory_space<vmem>>, vector<1x32xf32>
    %33 = vector.broadcast %32 : vector<1x32xf32> to vector<32x32xf32>
    %34 = arith.mulf %31, %33 : vector<32x32xf32>
    %c0_18 = arith.constant 0 : index
    %c0_19 = arith.constant 0 : index
    %35 = vector.load %arg7[%c0_18, %c0_19] : memref<1x32xf32, #tpu.memory_space<vmem>>, vector<1x32xf32>
    %36 = vector.broadcast %35 : vector<1x32xf32> to vector<32x32xf32>
    %37 = arith.addf %34, %36 : vector<32x32xf32>
    %c0_20 = arith.constant 0 : index
    %c0_21 = arith.constant 0 : index
    %38 = vector.load %arg8[%c0_20, %c0_21] : memref<32x32xf32, #tpu.memory_space<vmem>>, vector<32x32xf32>
    tpu.vector_store %arg8[%c0_20, %c0_21], %37 {strides = array<i32>} : memref<32x32xf32, #tpu.memory_space<vmem>>, vector<32x32xf32>,
    return
  }
  func.func @transform_0(%arg0: i32) -> (i32, i32) {
    %c0_i32 = arith.constant 0 : i32
    %c0_i32_0 = arith.constant 0 : i32
    return %arg0, %c0_i32 : i32, i32
  }
  func.func @transform_1(%arg0: i32) -> (i32, i32) {
    %c0_i32 = arith.constant 0 : i32
    %c0_i32_0 = arith.constant 0 : i32
    %c0_i32_1 = arith.constant 0 : i32
    return %c0_i32, %c0_i32_0 : i32, i32
  }
  func.func @transform_2(%arg0: i32) -> (i32, i32) {
    %c0_i32 = arith.constant 0 : i32
    %c0_i32_0 = arith.constant 0 : i32
    %c0_i32_1 = arith.constant 0 : i32
    return %c0_i32, %c0_i32_0 : i32, i32
  }
  func.func @transform_3(%arg0: i32) -> (i32, i32) {
    %c0_i32 = arith.constant 0 : i32
    %c0_i32_0 = arith.constant 0 : i32
    %c0_i32_1 = arith.constant 0 : i32
    return %c0_i32, %c0_i32_0 : i32, i32
  }
  func.func @transform_4(%arg0: i32) -> (i32, i32) {
    %c0_i32 = arith.constant 0 : i32
    %c0_i32_0 = arith.constant 0 : i32
    %c0_i32_1 = arith.constant 0 : i32
    return %c0_i32, %c0_i32_0 : i32, i32
  }
  func.func @transform_5(%arg0: i32) -> (i32, i32) {
    %c0_i32 = arith.constant 0 : i32
    %c0_i32_0 = arith.constant 0 : i32
    %c0_i32_1 = arith.constant 0 : i32
    return %c0_i32, %c0_i32_0 : i32, i32
  }
  func.func @transform_6(%arg0: i32) -> (i32, i32) {
    %c0_i32 = arith.constant 0 : i32
    %c0_i32_0 = arith.constant 0 : i32
    %c0_i32_1 = arith.constant 0 : i32
    return %c0_i32, %c0_i32_0 : i32, i32
  }
  func.func @transform_7(%arg0: i32) -> (i32, i32) {
    %c0_i32 = arith.constant 0 : i32
    %c0_i32_0 = arith.constant 0 : i32
    return %arg0, %c0_i32 : i32, i32
  }
}

module attributes {stable_mosaic.version = 11 : i64} {
  func.func @_pool_head_kernel(%arg0: i32, %arg1: i32, %arg2: memref<1x16x32xf32, #tpu.memory_space<vmem>>, %arg3: memref<32x5xf32, #tpu.memory_space<vmem>>, %arg4: memref<1x5xf32, #tpu.memory_space<vmem>>, %arg5: memref<1x1x5xf32, #tpu.memory_space<vmem>>, %arg6: memref<1x32xf32, #tpu.memory_space<vmem>>) attributes {dimension_semantics = [#tpu.dimension_semantics<parallel>, #tpu.dimension_semantics<arbitrary>], iteration_bounds = array<i64: 2, 1>, scalar_prefetch = 0 : i64, scratch_operands = 1 : i64, tpu.core_type = #tpu.core_type<tc>, window_params = [{transform_indices = @transform_0, window_bounds = array<i64: 1, 16, 32>}, {pipeline_mode = #tpu.pipeline_mode<synchronous>, transform_indices = @transform_1, window_bounds = array<i64: 32, 5>}, {pipeline_mode = #tpu.pipeline_mode<synchronous>, transform_indices = @transform_2, window_bounds = array<i64: 1, 5>}, {transform_indices = @transform_3, window_bounds = array<i64: 1, 1, 5>}]} {
    %c0_i32 = arith.constant 0 : i32
    %0 = arith.cmpi eq, %arg1, %c0_i32 : i32
    %1 = arith.extui %0 : i1 to i32
    %c0_i32_0 = arith.constant 0 : i32
    %2 = arith.cmpi ne, %1, %c0_i32_0 : i32
    scf.if %2 {
      %cst_10 = arith.constant 0.000000e+00 : f32
      %21 = vector.broadcast %cst_10 : f32 to vector<1x32xf32>
      %c0_11 = arith.constant 0 : index
      %c0_12 = arith.constant 0 : index
      %22 = vector.load %arg6[%c0_11, %c0_12] : memref<1x32xf32, #tpu.memory_space<vmem>>, vector<1x32xf32>
      tpu.vector_store %arg6[%c0_11, %c0_12], %21 {strides = array<i32>} : memref<1x32xf32, #tpu.memory_space<vmem>>, vector<1x32xf32>,
    } else {
    }
    %c0 = arith.constant 0 : index
    %c0_1 = arith.constant 0 : index
    %c0_2 = arith.constant 0 : index
    %3 = vector.load %arg2[%c0, %c0_1, %c0_2] : memref<1x16x32xf32, #tpu.memory_space<vmem>>, vector<1x16x32xf32>
    %4 = vector.shape_cast %3 : vector<1x16x32xf32> to vector<16x32xf32>
    %c16_i32 = arith.constant 16 : i32
    %5 = arith.muli %arg1, %c16_i32 : i32
    %6 = tpu.iota {dimensions = array<i32: 0>} : vector<16x32xi32>
    %7 = vector.broadcast %5 : i32 to vector<16x32xi32>
    %8 = arith.addi %7, %6 : vector<16x32xi32>
    %c12_i32 = arith.constant 12 : i32
    %9 = vector.broadcast %c12_i32 : i32 to vector<16x32xi32>
    %10 = arith.cmpi slt, %8, %9 : vector<16x32xi32>
    %cst = arith.constant 0.000000e+00 : f32
    %11 = vector.broadcast %cst : f32 to vector<16x32xf32>
    %12 = arith.select %10, %4, %11 : vector<16x32xi1>, vector<16x32xf32>
    %c0_3 = arith.constant 0 : index
    %c0_4 = arith.constant 0 : index
    %13 = vector.load %arg6[%c0_3, %c0_4] : memref<1x32xf32, #tpu.memory_space<vmem>>, vector<1x32xf32>
    %cst_5 = arith.constant dense<0.000000e+00> : vector<32xf32>
    %14 = vector.multi_reduction <add>, %12, %cst_5 [0] : vector<16x32xf32> to vector<32xf32>
    %15 = vector.shape_cast %14 : vector<32xf32> to vector<1x32xf32>
    %16 = arith.addf %13, %15 : vector<1x32xf32>
    %c0_6 = arith.constant 0 : index
    %c0_7 = arith.constant 0 : index
    %17 = vector.load %arg6[%c0_6, %c0_7] : memref<1x32xf32, #tpu.memory_space<vmem>>, vector<1x32xf32>
    tpu.vector_store %arg6[%c0_6, %c0_7], %16 {strides = array<i32>} : memref<1x32xf32, #tpu.memory_space<vmem>>, vector<1x32xf32>,
    %c0_i32_8 = arith.constant 0 : i32
    %18 = arith.cmpi eq, %arg1, %c0_i32_8 : i32
    %19 = arith.extui %18 : i1 to i32
    %c0_i32_9 = arith.constant 0 : i32
    %20 = arith.cmpi ne, %19, %c0_i32_9 : i32
    scf.if %20 {
      %c0_10 = arith.constant 0 : index
      %c0_11 = arith.constant 0 : index
      %21 = vector.load %arg6[%c0_10, %c0_11] : memref<1x32xf32, #tpu.memory_space<vmem>>, vector<1x32xf32>
      %cst_12 = arith.constant 0.0833333358 : f32
      %22 = vector.broadcast %cst_12 : f32 to vector<1x32xf32>
      %23 = arith.mulf %21, %22 : vector<1x32xf32>
      %c0_13 = arith.constant 0 : index
      %c0_14 = arith.constant 0 : index
      %24 = vector.load %arg3[%c0_13, %c0_14] : memref<32x5xf32, #tpu.memory_space<vmem>>, vector<32x5xf32>
      %cst_15 = arith.constant dense<0.000000e+00> : vector<1x5xf32>
      %25 = tpu.matmul %23, %24, %cst_15 {dimension_numbers = #tpu.dot_dimension_numbers<[1], [0], [0], [1], [0, 0, 1, 1], [], []>} : vector<1x32xf32>, vector<32x5xf32>, vector<1x5xf32> -> vector<1x5xf32>
      %c0_16 = arith.constant 0 : index
      %c0_17 = arith.constant 0 : index
      %26 = vector.load %arg4[%c0_16, %c0_17] : memref<1x5xf32, #tpu.memory_space<vmem>>, vector<1x5xf32>
      %27 = arith.addf %25, %26 : vector<1x5xf32>
      %c0_18 = arith.constant 0 : index
      %c0_19 = arith.constant 0 : index
      %c0_20 = arith.constant 0 : index
      %28 = vector.load %arg5[%c0_18, %c0_19, %c0_20] : memref<1x1x5xf32, #tpu.memory_space<vmem>>, vector<1x1x5xf32>
      %29 = vector.shape_cast %28 : vector<1x1x5xf32> to vector<1x5xf32>
      %30 = vector.shape_cast %27 : vector<1x5xf32> to vector<1x1x5xf32>
      tpu.vector_store %arg5[%c0_18, %c0_19, %c0_20], %30 {strides = array<i32>} : memref<1x1x5xf32, #tpu.memory_space<vmem>>, vector<1x1x5xf32>,
    } else {
    }
    return
  }
  func.func @transform_0(%arg0: i32, %arg1: i32) -> (i32, i32, i32) {
    %c0_i32 = arith.constant 0 : i32
    %c0_i32_0 = arith.constant 0 : i32
    return %arg0, %arg1, %c0_i32 : i32, i32, i32
  }
  func.func @transform_1(%arg0: i32, %arg1: i32) -> (i32, i32) {
    %c0_i32 = arith.constant 0 : i32
    %c0_i32_0 = arith.constant 0 : i32
    %c0_i32_1 = arith.constant 0 : i32
    return %c0_i32, %c0_i32_0 : i32, i32
  }
  func.func @transform_2(%arg0: i32, %arg1: i32) -> (i32, i32) {
    %c0_i32 = arith.constant 0 : i32
    %c0_i32_0 = arith.constant 0 : i32
    %c0_i32_1 = arith.constant 0 : i32
    return %c0_i32, %c0_i32_0 : i32, i32
  }
  func.func @transform_3(%arg0: i32, %arg1: i32) -> (i32, i32, i32) {
    %c0_i32 = arith.constant 0 : i32
    %c0_i32_0 = arith.constant 0 : i32
    %c0_i32_1 = arith.constant 0 : i32
    return %arg0, %c0_i32, %c0_i32_0 : i32, i32, i32
  }
}

</mosaic_0001>

<bundles_post_ra>
// kernel: transformer_classifier_forward.10
= control target key start
LH: loop header
LB: loop body
LE: loop exit
PB: predicated region body
PF: predicated region fallthrough
CT: control target
= control target key end

     0   :  { %s566_s15 = smov 0   ;;  %s568_s16 = smov 0   ;;  %s614_s0 = inlined_call_operand.vmem [shape: f32[2,16,16], index: 0, kind: input, shape index: {}]   ;;  %s615_s1 = inlined_call_operand.vmem [shape: f32[16,32], index: 1, kind: input, shape index: {}]   ;;  %s616_s2 = inlined_call_operand.vmem [shape: f32[1,32], index: 2, kind: input, shape index: {}]   ;;  %s617_s3 = inlined_call_operand.vmem [shape: f32[16,32], index: 3, kind: input, shape index: {}]   ;;  %s618_s4 = inlined_call_operand.vmem [shape: f32[2,16,32], index: 4, kind: output, shape index: {}]  }
   0x1   :  { %s570_s17 = smov 0  }
   0x2 LB: > { %s26_s18 = sadd.s32 1, %s535_s16  ;;  %p466_p0 = scmp.ge.s32.totalorder %s539_s17, 1  ;;  %s539_s17 = sphi %s570_s17, %s14_s17   ;;  %s535_s16 = sphi %s568_s16, %s620_s16   ;;  %s531_s15 = sphi %s566_s15, %s619_s15  }
   0x3   : > { %p28_p1 = scmp.ge.s32.totalorder %s26_s18, 2  ;;  %p194_p2 = scmp.lt.s32.totalorder %s539_s17, 3 }
   0x5   : > { %s622_s18 = smov (%p28_p1, %s26_s18), 0  ;;  %p195_p3 = pnand %p466_p0, %p194_p2 }
   0x6   : > { %v261_v0 = vld [vmem:[%s615_s1] sm:$0xff] (!%p195_p3)  ;;  %v262_v1 = vld [vmem:[%s615_s1 + $0x8] sm:$0xff] (!%p195_p3)  ;;  %p234_p4 = scmp.lt.s32.totalorder (!%p195_p3), %s531_s15, 1  ;;  %vm270_vm0 = vcmask (!%p195_p3), 130048   ;;  %vm356_vm1 = vcmask (!%p195_p3), 261120  }
   0x7   : > { %198 = sbr.rel (%p195_p3) target bundleno = 237 (0xed), region = 36  ;;  %v489_v2 = vpack.c.bf16 (!%p195_p3), %v262_v1, %v261_v0  ;;  %v471_v5 = vld [vmem:[%s616_s2] ss:$0 sm:$0xff] (!%p195_p3)  ;;  %v353_v7 = vld [vmem:[%s617_s3 + $0x8] sm:$0xff] (!%p195_p3) }
   0x8   : > { %v352_v10 = vld [vmem:[%s617_s3] sm:$0xff] (!%p195_p3) }
   0x9   : > { %490 = vmatprep.subr.bf16.mxu0 (!%p195_p3), %v489_v2 }
   0xa   : > { %492 = vmatpush3.bf16.msra.mxu0 (!%p195_p3), %v489_v2 }
   0xe   : > { %s624_s15 = smov (!%p234_p4, %s531_s15), 1 }
   0xf   : > { %s476_s23 = sshll.u32 %s624_s15, 4 }
  0x10   : > { %s241_s26 = scalar_lea.vmem %s614_s0, %s476_s23  ;;  %s257_s9 = scalar_lea.vmem %s618_s4, %s476_s23 }
  0x11   : > { %v259_v3 = vld [vmem:[%s241_s26] sm:$0xff]  ;;  %v260_v4 = vld [vmem:[%s241_s26 + $0x8] sm:$0xff] }
  0x12   : > { %486 = vmatprep.mubr.msk.f32.mxu0 %vm270_vm0, %v259_v3 }
  0x13   : > { %487 = vmatmul.mubr.msk.f32.vlgmr.msra.gmra.mrb[0].mxu0 %vm270_vm0, %v260_v4 }
  0xe6   : > { %v488_v6 = vpop.f32.mrb[0].mxu0 }
  0xe7   : > { %v349_v8 = vadd.f32 %v488_v6, %v471_v5  ;;  %v343_v9 = vpop.f32.mrb[1].mxu0 }
  0xe8   : > { %v344_v11 = vadd.f32 %v471_v5, %v343_v9 }
  0xe9   : > { %v355_v12 = vadd.f32 %v353_v7, %v349_v8 }
  0xea   : > { %v354_v13 = vadd.f32 %v352_v10, %v344_v11 }
  0xeb   : > { %358 = vst.msk [vmem:[%s257_s9 + $0x8] sm:$0xff] %vm356_vm1, %v355_v12 }
  0xec   : > { %357 = vst.msk [vmem:[%s257_s9] sm:$0xff] %vm356_vm1, %v354_v13 }
  0xed PF: > { %s14_s17 = sadd.s32 1, %s539_s17   ;;  %s619_s15 = smov %s535_s16 }
  0xee   : > { %p11_p5 = scmp.ge.s32.totalorder %s14_s17, 4   ;;  %s620_s16 = smov %s622_s18 }
  0xf0   :  { %13 = sbr.rel (!%p11_p5) target bundleno = 2 (0x2), region = 69 }

// kernel: transformer_classifier_forward.11
= control target key start
LH: loop header
LB: loop body
LE: loop exit
PB: predicated region body
PF: predicated region fallthrough
CT: control target
= control target key end

     0   :  { %s1378_s30 = smov 0   ;;  %s1380_s10 = smov 0   ;;  %s1476_s0 = inlined_call_operand.vmem [shape: f32[2,16,32], index: 0, kind: input, shape index: {}]   ;;  %s1477_s1 = inlined_call_operand.vmem [shape: f32[4,32,8], index: 1, kind: input, shape index: {}]   ;;  %s1478_s2 = inlined_call_operand.vmem [shape: f32[4,32,8], index: 2, kind: input, shape index: {}]   ;;  %s1479_s3 = inlined_call_operand.vmem [shape: f32[4,32,8], index: 3, kind: input, shape index: {}]   ;;  %s1480_s4 = inlined_call_operand.vmem [shape: f32[4,1,8], index: 4, kind: input, shape index: {}]   ;;  %s1481_s5 = inlined_call_operand.vmem [shape: f32[4,1,8], index: 5, kind: input, shape index: {}]   ;;  %s1482_s6 = inlined_call_operand.vmem [shape: f32[4,1,8], index: 6, kind: input, shape index: {}]   ;;  %s1483_s7 = inlined_call_operand.vmem [shape: f32[2,4,16,8], index: 7, kind: output, shape index: {0}]   ;;  %s1484_s8 = inlined_call_operand.vmem [shape: f32[2,4,16,8], index: 8, kind: output, shape index: {1}]   ;;  %s1485_s9 = inlined_call_operand.vmem [shape: f32[2,4,16,8], index: 9, kind: output, shape index: {2}]  }
   0x1   :  { %s1382_s11 = smov 0   ;;  %s1384_s12 = smov 0  }
   0x2   :  { %s1386_s13 = smov 0  }
   0x3 LB: > { %s32_s14 = sadd.s32 1, %s1318_s11  ;;  %s39_s15 = sadd.s32 1, %s1322_s12  ;;  %s1326_s13 = sphi %s1386_s13, %s20_s13   ;;  %s1322_s12 = sphi %s1384_s12, %s1489_s12   ;;  %s1318_s11 = sphi %s1382_s11, %s1488_s11   ;;  %s1314_s10 = sphi %s1380_s10, %s1487_s10   ;;  %s1310_s30 = sphi %s1378_s30, %s1486_s30  }
   0x4   : > { %p33_p0 = scmp.ge.s32.totalorder %s32_s14, 4  ;;  %p1140_p1 = scmp.ge.s32.totalorder %s1326_s13, 1 }
   0x5   : > { %p384_p2 = scmp.lt.s32.totalorder %s1326_s13, 9 }
   0x6   : > { %s1491_s14 = smov (%p33_p0, %s32_s14), 0  ;;  %s1493_s15 = smov (!%p33_p0, %s39_s15), %s1322_s12 }
   0x7   : > { %p385_p3 = pnand %p1140_p1, %p384_p2  ;;  %p41_p4 = scmp.ge.s32.totalorder %s1493_s15, 2 }
   0x8   : > { %p492_p5 = scmp.lt.s32.totalorder (!%p385_p3), %s1310_s30, 3  ;;  %p483_p6 = scmp.lt.s32.totalorder (!%p385_p3), %s1314_s10, 1  ;;  %vm571_vm0 = vcmask (!%p385_p3), 261120   ;;  %vm653_vm1 = vcmask (!%p385_p3), 64512  }
   0x9   : > { %s1495_s15 = smov (%p41_p4, %s1493_s15), 0  ;;  %388 = sbr.rel (%p385_p3) target bundleno = 254 (0xfe), region = 48 }
  0x10   : > { %s1497_s30 = smov (!%p492_p5, %s1310_s30), 3  ;;  %s1499_s10 = smov (!%p483_p6, %s1314_s10), 1 }
  0x11   : > { %s1170_s16 = sshll.u32 %s1497_s30, 5  ;;  %s1169_s20 = sshll.u32 %s1499_s10, 4 }
  0x12   : > { %s496_s19 = scalar_lea.vmem %s1477_s1, %s1170_s16  ;;  %s490_s23 = scalar_lea.vmem %s1476_s0, %s1169_s20 }
  0x13   : > { %v560_v0 = vld [vmem:[%s496_s19] sm:$0xff]  ;;  %v561_v1 = vld [vmem:[%s496_s19 + $0x8] sm:$0xff]  ;;  %v562_v2 = vld [vmem:[%s496_s19 + $0x10] sm:$0xff]  ;;  %s501_s26 = scalar_lea.vmem %s1478_s2, %s1170_s16  ;;  %s506_s29 = scalar_lea.vmem %s1479_s3, %s1170_s16 }
  0x14   : > { %v1224_v3 = vpack.c.bf16 %v561_v1, %v560_v0  ;;  %v563_v4 = vld [vmem:[%s496_s19 + $0x18] sm:$0xff]  ;;  %v558_v5 = vld [vmem:[%s490_s23] sm:$0xff]  ;;  %v657_v8 = vld [vmem:[%s501_s26 + $0x8] sm:$0xff]  ;;  %s1149_s16 = sshll.u32 %s1497_s30, 1  ;;  %s1150_s17 = sshll.u32 %s1499_s10, 3 }
  0x15   : > { %v1228_v6 = vpack.c.bf16 %v563_v4, %v562_v2  ;;  %1199 = vmatprep.mubr.msk.f32.mxu0 %vm571_vm0, %v558_v5  ;;  %v656_v7 = vld [vmem:[%s501_s26] sm:$0xff]  ;;  %v658_v9 = vld [vmem:[%s501_s26 + $0x10] sm:$0xff]  ;;  %1210 = vmatprep.mubr.msk.f32.mxu1 %vm571_vm0, %v558_v5  ;;  %v745_v12 = vld [vmem:[%s506_s29 + $0x8] sm:$0xff]  ;;  %s526_s18 = sadd.s32 %s1150_s17, %s1149_s16  ;;  %s509_s21 = scalar_lea.vmem %s1480_s4, %s1497_s30 }
  0x16   : > { %1225 = vmatprep.subr.bf16.mxu0 %v1224_v3  ;;  %v1232_v10 = vpack.c.bf16 %v657_v8, %v656_v7  ;;  %v744_v11 = vld [vmem:[%s506_s29] sm:$0xff]  ;;  %v659_v13 = vld [vmem:[%s501_s26 + $0x18] sm:$0xff]  ;;  %v746_v16 = vld [vmem:[%s506_s29 + $0x10] sm:$0xff]  ;;  %s1151_s22 = sshll.u32 %s526_s18, 3  ;;  %s512_s25 = scalar_lea.vmem %s1481_s5, %s1497_s30 }
  0x17   : > { %1227 = vmatpush3.bf16.msra.mxu0 %v1224_v3  ;;  %v1236_v14 = vpack.c.bf16 %v659_v13, %v658_v9  ;;  %v1240_v15 = vpack.c.bf16 %v745_v12, %v744_v11  ;;  %v747_v17 = vld [vmem:[%s506_s29 + $0x18] sm:$0xff]  ;;  %v559_v18 = vld [vmem:[%s490_s23 + $0x8] sm:$0xff]  ;;  %v1158_v20 = vld [vmem:[%s509_s21] ss:$0 sm:$0xff]  ;;  %s528_s28 = scalar_lea.vmem %s1483_s7, %s1151_s22  ;;  %s542_s16 = scalar_lea.vmem %s1484_s8, %s1151_s22 }
  0x18   : > { %1229 = vmatprep.subr.bf16.mxu0 %v1228_v6  ;;  %1233 = vmatprep.subr.bf16.mxu1 %v1232_v10  ;;  %v1244_v19 = vpack.c.bf16 %v747_v17, %v746_v16  ;;  %v1161_v22 = vld [vmem:[%s512_s25] ss:$0 sm:$0xff]  ;;  %s515_s19 = scalar_lea.vmem %s1482_s6, %s1497_s30  ;;  %s556_s23 = scalar_lea.vmem %s1485_s9, %s1151_s22 }
  0x19   : > { %1235 = vmatpush3.bf16.msra.mxu1 %v1232_v10  ;;  %v1164_v30 = vld [vmem:[%s515_s19] ss:$0 sm:$0xff] }
  0x1a   : > { %1237 = vmatprep.subr.bf16.mxu1 %v1236_v14 }
  0x1b   : > { %1231 = vmatpush3.bf16.msra.mxu0 %v1228_v6 }
  0x1c   : > { %1241 = vmatprep.subr.bf16.mxu0 %v1240_v15 }
  0x1d   : > { %1239 = vmatpush3.bf16.msra.mxu1 %v1236_v14 }
  0x1e   : > { %1200 = vmatmul.mubr.msk.f32.vlgmr.msra.gmra.mrb[0].mxu0 %vm571_vm0, %v559_v18 }
  0x1f   : > { %1243 = vmatpush3.bf16.msra.mxu0 %v1240_v15  ;;  %1221 = vmatprep.mubr.msk.f32.mxu0 %vm571_vm0, %v558_v5 }
  0x20   : > { %1245 = vmatprep.subr.bf16.mxu0 %v1244_v19  ;;  %1211 = vmatmul.mubr.msk.f32.vlgmr.msra.gmra.mrb[0].mxu1 %vm571_vm0, %v559_v18 }
  0x23   : > { %1247 = vmatpush3.bf16.msra.mxu0 %v1244_v19 }
  0x26   : > { %1222 = vmatmul.mubr.msk.f32.vlgmr.msra.gmra.mrb[2].mxu0 %vm571_vm0, %v559_v18 }
  0xf1   : > { %v1201_v21 = vpop.f32.mrb[0].mxu0 }
  0xf2   : > { %v650_v23 = vadd.f32 %v1201_v21, %v1158_v20  ;;  %v644_v24 = vpop.f32.mrb[1].mxu0 }
  0xf3   : > { %v645_v25 = vadd.f32 %v1158_v20, %v644_v24  ;;  %v1212_v26 = vpop.f32.mrb[0].mxu1 }
  0xf4   : > { %655 = vst.msk [vmem:[%s528_s28 + $0x8] sm:$0xff] %vm653_vm1, %v650_v23  ;;  %v739_v27 = vadd.f32 %v1212_v26, %v1161_v22  ;;  %v733_v28 = vpop.f32.mrb[1].mxu1 }
  0xf5   : > { %654 = vst.msk [vmem:[%s528_s28] sm:$0xff] %vm653_vm1, %v645_v25  ;;  %v734_v29 = vadd.f32 %v1161_v22, %v733_v28 }
  0xf6   : > { %743 = vst.msk [vmem:[%s542_s16 + $0x8] sm:$0xff] %vm653_vm1, %v739_v27 }
  0xf7   : > { %742 = vst.msk [vmem:[%s542_s16] sm:$0xff] %vm653_vm1, %v734_v29 }
  0xf9   : > { %v1223_v31 = vpop.f32.mrb[2].mxu0 }
  0xfa   : > { %v827_v32 = vadd.f32 %v1223_v31, %v1164_v30  ;;  %v821_v33 = vpop.f32.mrb[3].mxu0 }
  0xfb   : > { %v822_v34 = vadd.f32 %v1164_v30, %v821_v33 }
  0xfc   : > { %831 = vst.msk [vmem:[%s556_s23 + $0x8] sm:$0xff] %vm653_vm1, %v827_v32 }
  0xfd   : > { %830 = vst.msk [vmem:[%s556_s23] sm:$0xff] %vm653_vm1, %v822_v34 }
  0xfe PF: > { %s20_s13 = sadd.s32 1, %s1326_s13   ;;  %s1486_s30 = smov %s1318_s11 }
  0xff   : > { %p17_p7 = scmp.ge.s32.totalorder %s20_s13, 10   ;;  %s1487_s10 = smov %s1322_s12 }
 0x100   : > { %s1488_s11 = smov %s1491_s14  ;;  %s1489_s12 = smov %s1495_s15 }
 0x101   :  { %19 = sbr.rel (!%p17_p7) target bundleno = 3 (0x3), region = 120 }

// kernel: transformer_classifier_forward.12
= control target key start
LH: loop header
LB: loop body
LE: loop exit
PB: predicated region body
PF: predicated region fallthrough
CT: control target
= control target key end

     0   :  { %s977_s12 = smov 0   ;;  %s979_s13 = smov 0   ;;  %s1064_s0 = inlined_call_operand.vmem [shape: f32[2,4,16,8], index: 0, kind: input, shape index: {}]   ;;  %s1065_s1 = inlined_call_operand.vmem [shape: f32[2,4,16,8], index: 1, kind: input, shape index: {}]   ;;  %s1066_s2 = inlined_call_operand.vmem [shape: f32[2,4,16,8], index: 2, kind: input, shape index: {}]   ;;  %s1067_s3 = inlined_call_operand.vmem [shape: f32[2,4,16,8], index: 3, kind: output, shape index: {}]  }
   0x1   :  { %s981_s14 = smov 0   ;;  %s983_s15 = smov 0  }
   0x2   :  { %s985_s16 = smov 0  }
   0x3 LB: > { %s35_s17 = sadd.s32 1, %s944_s14  ;;  %s39_s18 = sadd.s32 1, %s948_s15  ;;  %s952_s16 = sphi %s985_s16, %s13_s16   ;;  %s948_s15 = sphi %s983_s15, %s1071_s15   ;;  %s944_s14 = sphi %s981_s14, %s1070_s14   ;;  %s940_s13 = sphi %s979_s13, %s1069_s13   ;;  %s936_s12 = sphi %s977_s12, %s1068_s12  }
   0x4   : > { %p37_p0 = scmp.ge.s32.totalorder %s35_s17, 4  ;;  %p804_p1 = scmp.ge.s32.totalorder %s952_s16, 1 }
   0x5   : > { %p226_p2 = scmp.lt.s32.totalorder %s952_s16, 9 }
   0x6   : > { %s1073_s17 = smov (%p37_p0, %s35_s17), 0  ;;  %s1075_s18 = smov (!%p37_p0, %s39_s18), %s948_s15 }
   0x7   : > { %p227_p3 = pnand %p804_p1, %p226_p2  ;;  %p41_p4 = scmp.ge.s32.totalorder %s1075_s18, 2 }
   0x8   : > { %p293_p5 = scmp.lt.s32.totalorder (!%p227_p3), %s940_s13, 1  ;;  %p295_p6 = scmp.lt.s32.totalorder (!%p227_p3), %s936_s12, 3  ;;  %vm357_vm0 = vcmask (!%p227_p3), 64512   ;;  %vm352_vm2 = vcmask (!%p227_p3), 7168   ;;  %v954_v5 = vmov (!%p227_p3), -inf   ;;  %v455_v6 = vlaneseq (!%p227_p3) }
   0x9   : > { %s1077_s18 = smov (%p41_p4, %s1075_s18), 0  ;;  %230 = sbr.rel (%p227_p3) target bundleno = 833 (0x341), region = 32 }
   0xa   : > { %vm848_vm1 = vmpackc.low (!%p227_p3), %vm357_vm0, %vm357_vm0  ;;  %353 = vst.msk [vmem:[#allocation2] sm:$0xff] (!%p227_p3), %vm352_vm2, %v954_v5  ;;  %v456_v7 = vand.u32 (!%p227_p3), 127, %v455_v6  ;;  %vm464_vm4 = vcmask (!%p227_p3), 130048   ;;  %v955_v14 = vmov (!%p227_p3), 0   ;;  %v956_v15 = vmov (!%p227_p3), 0.0  }
   0xb   : > { %354 = vst.msk [vmem:[#allocation2 + $0x8] sm:$0xff] (!%p227_p3), %vm352_vm2, %v954_v5  ;;  %900 = vset.pattern.permute.xlu1 (!%p227_p3), %v955_v14  ;;  %901 = vset.pattern.permute.xlu0 (!%p227_p3), %v955_v14  ;;  %355 = vst.msk [vmem:[#allocation3] sm:$0xff] (!%p227_p3), %vm352_vm2, %v956_v15 }
   0xc   : > { %vm459_vm3 = vcmp.lt.s32.totalorder (!%p227_p3), %v456_v7, 12  ;;  %358 = vst.msk [vmem:[#allocation4] sm:$0xff] (!%p227_p3), %vm357_vm0, %v956_v15  ;;  %359 = vst.msk [vmem:[#allocation4 + $0x8] sm:$0xff] (!%p227_p3), %vm357_vm0, %v956_v15 }
   0xd   : > { %356 = vst.msk [vmem:[#allocation3 + $0x8] sm:$0xff] (!%p227_p3), %vm352_vm2, %v956_v15 }
  0x10   : > { %s1079_s13 = smov (!%p293_p5, %s940_s13), 1  ;;  %s1081_s12 = smov (!%p295_p6, %s936_s12), 3 }
  0x11   : > { %s806_s19 = sshll.u32 %s1079_s13, 3  ;;  %s805_s20 = sshll.u32 %s1081_s12, 1  ;;  %v462_v16 = vld [vmem:[#allocation2] sm:$0xff] }
  0x12   : > { %s302_s21 = sadd.s32 %s806_s19, %s805_s20  ;;  %v463_v19 = vld [vmem:[#allocation2 + $0x8] sm:$0xff]  ;;  %v495_v41 = vld [vmem:[#allocation3] sm:$0xff] }
  0x13   : > { %s1007_s22 = sshll.u32 %s302_s21, 3  ;;  %v511_v53 = vld [vmem:[#allocation4 + $0x8] sm:$0xff]  ;;  %v510_v55 = vld [vmem:[#allocation4] sm:$0xff] }
  0x14   : > { %s318_s25 = scalar_lea.vmem %s1065_s1, %s1007_s22  ;;  %s304_s28 = scalar_lea.vmem %s1064_s0, %s1007_s22  ;;  %v496_v44 = vld [vmem:[#allocation3 + $0x8] sm:$0xff] }
  0x15   : > { %v362_v0 = vld [vmem:[%s318_s25] sm:$0xff]  ;;  %v363_v1 = vld [vmem:[%s318_s25 + $0x8] sm:$0xff]  ;;  %s332_s4 = scalar_lea.vmem %s1066_s2, %s1007_s22  ;;  %s346_s7 = scalar_lea.vmem %s1067_s3, %s1007_s22 }
  0x16   : > { %v360_v2 = vld [vmem:[%s304_s28] sm:$0xff]  ;;  %v847_v3 = vpack.c.bf16 %v363_v1, %v362_v0  ;;  %v361_v4 = vld [vmem:[%s304_s28 + $0x8] sm:$0xff] }
  0x17   : > { %837 = vmatprep.mubr.msk.f32.mxu0 %vm357_vm0, %v360_v2  ;;  %v364_v24 = vld [vmem:[%s332_s4] sm:$0xff]  ;;  %v365_v25 = vld [vmem:[%s332_s4 + $0x8] sm:$0xff] }
  0x18   : > { %849 = vmatprep.subr.msk.bf16.mxu0 %vm848_vm1, %v847_v3  ;;  %v853_v26 = vpack.c.bf16 %v365_v25, %v364_v24 }
  0x19   : > { %852 = vmatpush3.bf16.xpose.msk.msra.mxu0 %vm848_vm1, %v847_v3 }
  0x1a   : > { %854 = vmatprep.subr.bf16.mxu1 %v853_v26 }
  0x1b   : > { %856 = vmatpush3.bf16.msra.mxu1 %v853_v26 }
  0x20   : > { %838 = vmatmul.mubr.msk.f32.vlgmr.msra.gmra.mrb[0].mxu0 %vm357_vm0, %v361_v4 }
  0xf3   : > { %v839_v8 = vpop.f32.mrb[0].mxu0 }
  0xf4   : > { %v445_v9 = vpop.f32.mrb[1].mxu0  ;;  %v461_v12 = vsel %vm459_vm3, %v839_v8, -inf }
  0xf5   : > { %v460_v10 = vsel %vm459_vm3, %v445_v9, -inf  ;;  %v468_v13 = vsel %vm464_vm4, %v461_v12, -inf }
  0xf6   : > { %v465_v11 = vsel %vm464_vm4, %v460_v10, -inf }
  0xf7   : > { %466 = vmax.xlane.f32.xlu0 %v465_v11 }
  0xfb   : > { %469 = vmax.xlane.f32.xlu0 %v468_v13 }
 0x184   : > { %v467_v17 = vpop.xlane.xlu0 %466 }
 0x185   : > { %v471_v18 = vmax.f32 %v462_v16, %v467_v17 }
 0x187   : > { %v473_v20 = vsub.f32 %v462_v16, %v471_v18  ;;  %609 = vst.msk [vmem:[#allocation2] sm:$0xff] %vm352_vm2, %v471_v18  ;;  %481 = vperm.xlu1 %900, %v471_v18  }
 0x188   : > { %v470_v21 = vpop.xlane.xlu0 %469 }
 0x189   : > { %v472_v22 = vmax.f32 %v463_v19, %v470_v21  ;;  %v475_v38 = vmul.f32 1.442695, %v473_v20 }
 0x18b   : > { %v474_v23 = vsub.f32 %v463_v19, %v472_v22  ;;  %610 = vst.msk [vmem:[#allocation2 + $0x8] sm:$0xff] %vm352_vm2, %v472_v22  ;;  %486 = vperm.xlu1 %900, %v472_v22  }
 0x18d   : > { %v477_v37 = vmul.f32 1.442695, %v474_v23 }
 0x206   : > { %v482_v27 = vpop.permute.xlu1 %481 }
 0x207   : > { %v489_v28 = vsub.f32 %v460_v10, %v482_v27 }
 0x209   : > { %v491_v29 = vmul.f32 1.442695, %v489_v28 }
 0x20a   : > { %v487_v30 = vpop.permute.xlu1 %486 }
 0x20b   : > { %902 = vpow2.f32 %v491_v29  ;;  %v490_v31 = vsub.f32 %v461_v12, %v487_v30 }
 0x20d   : > { %v493_v32 = vmul.f32 1.442695, %v490_v31 }
 0x20f   : > { %904 = vpow2.f32 %v493_v32 }
 0x210   : > { %906 = vpow2.f32 %v477_v37 }
 0x211   : > { %908 = vpow2.f32 %v475_v38 }
 0x215   : > { %v903_v33 = vpop.eup %902 }
 0x216   : > { %844 = vmatprep.mubr.msk.f32.mxu1 %vm464_vm4, %v903_v33  ;;  %v499_v34 = vsel %vm464_vm4, %v903_v33, 0.0 }
 0x217   : > { %500 = vadd.xlane.f32.xlu0 %v499_v34 }
 0x219   : > { %v905_v35 = vpop.eup %904 }
 0x21a   : > { %845 = vmatmul.mubr.msk.f32.vlgmr.msra.gmra.mrb[0].mxu1 %vm464_vm4, %v905_v35  ;;  %v502_v36 = vsel %vm464_vm4, %v905_v35, 0.0  ;;  %v907_v39 = vpop.eup %906 }
 0x21b   : > { %503 = vadd.xlane.f32.xlu1 %v502_v36  ;;  %v909_v40 = vpop.eup %908  ;;  %v498_v46 = vmul.f32 %v907_v39, %v496_v44 }
 0x21c   : > { %v497_v42 = vmul.f32 %v909_v40, %v495_v41 }
 0x22c   : > { %519 = vperm.xlu1 %900, %v907_v39  }
 0x22d   : > { %514 = vperm.xlu0 %901, %v909_v40  }
 0x2a4   : > { %v501_v43 = vpop.xlane.xlu0 %500 }
 0x2a5   : > { %v505_v45 = vadd.f32 %v501_v43, %v497_v42 }
 0x2a7   : > { %508 = vst.msk [vmem:[#allocation3] sm:$0xff] %vm352_vm2, %v505_v45 }
 0x2a8   : > { %v504_v47 = vpop.xlane.xlu1 %503 }
 0x2a9   : > { %v506_v48 = vadd.f32 %v504_v47, %v498_v46 }
 0x2ab   : > { %509 = vst.msk [vmem:[#allocation3 + $0x8] sm:$0xff] %vm352_vm2, %v506_v48 }
 0x2ac   : > { %v520_v54 = vpop.permute.xlu1 %519  ;;  %v515_v56 = vpop.permute.xlu0 %514 }
 0x2ad   : > { %v523_v57 = vmul.f32 %v520_v54, %v511_v53  ;;  %v522_v58 = vmul.f32 %v515_v56, %v510_v55 }
 0x2ae   : > { %v616_v49 = vld [vmem:[#allocation3] sm:$0xff] }
 0x2af   : > { %910 = vrcp.f32 %v616_v49 }
 0x2b2   : > { %v617_v50 = vld [vmem:[#allocation3 + $0x8] sm:$0xff] }
 0x2b3   : > { %912 = vrcp.f32 %v617_v50 }
 0x2b9   : > { %v911_v51 = vpop.eup %910 }
 0x2ba   : > { %622 = vperm.xlu0 %901, %v911_v51  }
 0x2bd   : > { %v913_v52 = vpop.eup %912 }
 0x2be   : > { %627 = vperm.xlu0 %901, %v913_v52  }
 0x2ed   : > { %v846_v59 = vpop.f32.mrb[0].mxu1 }
 0x2ee   : > { %v606_v60 = vadd.f32 %v846_v59, %v523_v57  ;;  %v596_v61 = vpop.f32.mrb[1].mxu1 }
 0x2ef   : > { %v605_v62 = vadd.f32 %v596_v61, %v522_v58 }
 0x2f0   : > { %608 = vst.msk [vmem:[#allocation4 + $0x8] sm:$0xff] %vm357_vm0, %v606_v60 }
 0x2f1   : > { %607 = vst.msk [vmem:[#allocation4] sm:$0xff] %vm357_vm0, %v605_v62 }
 0x2f7   : > { %v615_v2 = vld [vmem:[#allocation4 + $0x8] sm:$0xff] }
 0x2f8   : > { %v614_v63 = vld [vmem:[#allocation4] sm:$0xff] }
 0x339   : > { %v623_v0 = vpop.permute.xlu0 %622 }
 0x33a   : > { %v630_v1 = vmul.f32 %v623_v0, %v614_v63 }
 0x33c   : > { %632 = vst.msk [vmem:[%s346_s7] sm:$0xff] %vm357_vm0, %v630_v1 }
 0x33d   : > { %v628_v3 = vpop.permute.xlu0 %627 }
 0x33e   : > { %v631_v4 = vmul.f32 %v628_v3, %v615_v2 }
 0x340   : > { %633 = vst.msk [vmem:[%s346_s7 + $0x8] sm:$0xff] %vm357_vm0, %v631_v4 }
 0x341 PF: > { %s13_s16 = sadd.s32 1, %s952_s16   ;;  %s1068_s12 = smov %s944_s14 }
 0x342   : > { %p10_p7 = scmp.ge.s32.totalorder %s13_s16, 10   ;;  %s1069_s13 = smov %s948_s15 }
 0x343   : > { %s1070_s14 = smov %s1073_s17  ;;  %s1071_s15 = smov %s1077_s18 }
 0x344   :  { %12 = sbr.rel (!%p10_p7) target bundleno = 3 (0x3), region = 76 }

// kernel: transformer_classifier_forward.13
= control target key start
LH: loop header
LB: loop body
LE: loop exit
PB: predicated region body
PF: predicated region fallthrough
CT: control target
= control target key end

     0   :  { %s1001_s21 = smov 0   ;;  %s1003_s22 = smov 0   ;;  %s1080_s0 = inlined_call_operand.vmem [shape: f32[2,4,16,8], index: 0, kind: input, shape index: {}]   ;;  %s1081_s1 = inlined_call_operand.vmem [shape: f32[4,8,32], index: 1, kind: input, shape index: {}]   ;;  %s1082_s2 = inlined_call_operand.vmem [shape: f32[1,32], index: 2, kind: input, shape index: {}]   ;;  %s1083_s3 = inlined_call_operand.vmem [shape: f32[2,16,32], index: 3, kind: input, shape index: {}]   ;;  %s1084_s4 = inlined_call_operand.vmem [shape: f32[1,32], index: 4, kind: input, shape index: {}]   ;;  %s1085_s5 = inlined_call_operand.vmem [shape: f32[1,32], index: 5, kind: input, shape index: {}]   ;;  %s1086_s6 = inlined_call_operand.vmem [shape: f32[2,16,32], index: 6, kind: output, shape index: {}]  }
   0x1   :  { %s1005_s23 = smov 0  }
   0x2 LB: > { %s28_s24 = sadd.s32 1, %s960_s22  ;;  %p844_p0 = scmp.ge.s32.totalorder %s964_s23, 1  ;;  %s964_s23 = sphi %s1005_s23, %s16_s23   ;;  %s960_s22 = sphi %s1003_s22, %s1088_s22   ;;  %s956_s21 = sphi %s1001_s21, %s1087_s21  }
   0x3   : > { %p30_p1 = scmp.ge.s32.totalorder %s28_s24, 2  ;;  %p250_p2 = scmp.lt.s32.totalorder %s964_s23, 3 }
   0x5   : > { %s1090_s24 = smov (%p30_p1, %s28_s24), 0  ;;  %p251_p3 = pnand %p844_p0, %p250_p2 }
   0x6   : > { %v853_v0 = vld [vmem:[%s1081_s1 + $0x8] sm:$0xff] (!%p251_p3)  ;;  %v860_v1 = vld [vmem:[%s1081_s1 + $0x10] sm:$0xff] (!%p251_p3)  ;;  %p298_p4 = scmp.lt.s32.totalorder (!%p251_p3), %s956_s21, 1  ;;  %v331_v2 = vld [vmem:[%s1081_s1] sm:$0xff] (!%p251_p3)  ;;  %vm337_vm0 = vcmask (!%p251_p3), 64512   ;;  %vm687_vm1 = vcmask (!%p251_p3), 261120  }
   0x7   : > { %254 = sbr.rel (%p251_p3) target bundleno = 564 (0x234), region = 44  ;;  %888 = vmatprep.subr.mxu1 (!%p251_p3), %v853_v0  ;;  %898 = vmatprep.subr.mxu0 (!%p251_p3), %v860_v1  ;;  %v865_v3 = vld [vmem:[%s1081_s1 + $0x18] sm:$0xff] (!%p251_p3)  ;;  %v868_v20 = vld [vmem:[%s1082_s2] ss:$0 sm:$0xff] (!%p251_p3) }
   0x8   : > { %889 = vmatpush3.msra.mxu1 (!%p251_p3), %v853_v0  ;;  %899 = vmatpush3.msra.mxu0 (!%p251_p3), %v860_v1  ;;  %v869_v44 = vld [vmem:[%s1084_s4] ss:$0 sm:$0xff] (!%p251_p3) }
   0x9   : > { %893 = vmatprep.subr.mxu1 (!%p251_p3), %v331_v2  ;;  %903 = vmatprep.subr.mxu0 (!%p251_p3), %v865_v3  ;;  %v870_v46 = vld [vmem:[%s1085_s5] ss:$0 sm:$0xff] (!%p251_p3) }
   0xe   : > { %s1092_s21 = smov (!%p298_p4, %s956_s21), 1 }
   0xf   : > { %s873_s9 = sshll.u32 %s1092_s21, 6  ;;  %s874_s13 = sshll.u32 %s1092_s21, 4 }
  0x10   : > { %s305_s12 = scalar_lea.vmem %s1080_s0, %s873_s9  ;;  %s315_s16 = scalar_lea.vmem %s1083_s3, %s874_s13 }
  0x11   : > { %v851_v4 = vld [vmem:[%s305_s12 + $0x10] sm:$0xff]  ;;  %v858_v5 = vld [vmem:[%s305_s12 + $0x20] sm:$0xff]  ;;  %v852_v6 = vld [vmem:[%s305_s12 + $0x18] sm:$0xff]  ;;  %s325_s29 = scalar_lea.vmem %s1086_s6, %s874_s13 }
  0x12   : > { %890 = vmatprep.mubr.msk.f32.mxu1 %vm337_vm0, %v851_v4  ;;  %900 = vmatprep.mubr.msk.f32.mxu0 %vm337_vm0, %v858_v5  ;;  %v859_v7 = vld [vmem:[%s305_s12 + $0x28] sm:$0xff]  ;;  %v329_v8 = vld [vmem:[%s305_s12] sm:$0xff]  ;;  %v863_v9 = vld [vmem:[%s305_s12 + $0x30] sm:$0xff] }
  0x13   : > { %891 = vmatmul.mubr.msk.f32.vlgmr.msra.gmra.mrb[0].mxu1 %vm337_vm0, %v852_v6  ;;  %901 = vmatmul.mubr.msk.f32.vlgmr.msra.gmra.mrb[0].mxu0 %vm337_vm0, %v859_v7  ;;  %v330_v10 = vld [vmem:[%s305_s12 + $0x8] sm:$0xff]  ;;  %v864_v11 = vld [vmem:[%s305_s12 + $0x38] sm:$0xff]  ;;  %v327_v17 = vld [vmem:[%s315_s16] sm:$0xff] }
  0x14   : > { %894 = vmatpush3.msra.mxu1 %v331_v2  ;;  %904 = vmatpush3.msra.mxu0 %v865_v3  ;;  %v328_v14 = vld [vmem:[%s315_s16 + $0x8] sm:$0xff] }
  0x15   : > { %895 = vmatprep.mubr.msk.f32.mxu1 %vm337_vm0, %v329_v8  ;;  %905 = vmatprep.mubr.msk.f32.mxu0 %vm337_vm0, %v863_v9 }
  0x1b   : > { %896 = vmatmul.mubr.msk.f32.vlgmr.msra.gmra.mrb[0].mxu1 %vm337_vm0, %v330_v10  ;;  %906 = vmatmul.mubr.msk.f32.vlgmr.msra.gmra.mrb[0].mxu0 %vm337_vm0, %v864_v11 }
  0xee   : > { %v897_v12 = vpop.f32.mrb[0].mxu1  ;;  %v907_v13 = vpop.f32.mrb[0].mxu0 }
  0xef   : > { %v908_v15 = vadd.f32 %v907_v13, %v897_v12  ;;  %v491_v16 = vpop.f32.mrb[1].mxu1  ;;  %v665_v18 = vpop.f32.mrb[1].mxu0 }
  0xf0   : > { %v909_v19 = vadd.f32 %v665_v18, %v491_v16 }
  0xf1   : > { %v677_v21 = vadd.f32 %v908_v15, %v328_v14 }
  0xf2   : > { %v676_v22 = vadd.f32 %v909_v19, %v327_v17 }
  0xf3   : > { %v686_v25 = vadd.f32 %v868_v20, %v677_v21 }
  0xf4   : > { %v685_v23 = vadd.f32 %v868_v20, %v676_v22 }
  0xf5   : > { %v691_v26 = vsel %vm687_vm1, %v686_v25, 0.0 }
  0xf6   : > { %v688_v24 = vsel %vm687_vm1, %v685_v23, 0.0 }
  0xf7   : > { %689 = vadd.xlane.f32.xlu0 %v688_v24 }
  0xfb   : > { %692 = vadd.xlane.f32.xlu0 %v691_v26 }
 0x184   : > { %v690_v27 = vpop.xlane.xlu0 %689 }
 0x185   : > { %v695_v28 = vmul.f32 0.03125, %v690_v27 }
 0x187   : > { %v697_v29 = vsub.f32 %v685_v23, %v695_v28 }
 0x188   : > { %v693_v30 = vpop.xlane.xlu0 %692 }
 0x189   : > { %v696_v31 = vmul.f32 0.03125, %v693_v30  ;;  %v699_v32 = vmul.f32 %v697_v29, %v697_v29 }
 0x18b   : > { %v698_v33 = vsub.f32 %v686_v25, %v696_v31  ;;  %v701_v34 = vsel %vm687_vm1, %v699_v32, 0.0 }
 0x18c   : > { %702 = vadd.xlane.f32.xlu1 %v701_v34 }
 0x18d   : > { %v700_v35 = vmul.f32 %v698_v33, %v698_v33 }
 0x18f   : > { %v704_v36 = vsel %vm687_vm1, %v700_v35, 0.0 }
 0x190   : > { %705 = vadd.xlane.f32.xlu1 %v704_v36 }
 0x219   : > { %v703_v37 = vpop.xlane.xlu1 %702 }
 0x21a   : > { %v707_v38 = vmul.f32 0.03125, %v703_v37 }
 0x21c   : > { %v709_v39 = vadd.f32 1e-05, %v707_v38 }
 0x21d   : > { %v706_v40 = vpop.xlane.xlu1 %705 }
 0x21e   : > { %938 = vrsqrt.f32 %v709_v39  ;;  %v708_v41 = vmul.f32 0.03125, %v706_v40 }
 0x220   : > { %v710_v42 = vadd.f32 1e-05, %v708_v41 }
 0x222   : > { %940 = vrsqrt.f32 %v710_v42 }
 0x228   : > { %v939_v43 = vpop.eup %938 }
 0x229   : > { %v713_v45 = vmul.f32 %v939_v43, %v697_v29 }
 0x22b   : > { %v722_v47 = vmul.f32 %v869_v44, %v713_v45 }
 0x22c   : > { %v941_v48 = vpop.eup %940 }
 0x22d   : > { %v731_v49 = vadd.f32 %v870_v46, %v722_v47  ;;  %v714_v50 = vmul.f32 %v941_v48, %v698_v33 }
 0x22f   : > { %733 = vst.msk [vmem:[%s325_s29] sm:$0xff] %vm687_vm1, %v731_v49  ;;  %v723_v51 = vmul.f32 %v869_v44, %v714_v50 }
 0x231   : > { %v732_v52 = vadd.f32 %v870_v46, %v723_v51 }
 0x233   : > { %734 = vst.msk [vmem:[%s325_s29 + $0x8] sm:$0xff] %vm687_vm1, %v732_v52 }
 0x234 PF: > { %s16_s23 = sadd.s32 1, %s964_s23   ;;  %s1087_s21 = smov %s960_s22 }
 0x235   : > { %p13_p5 = scmp.ge.s32.totalorder %s16_s23, 4   ;;  %s1088_s22 = smov %s1090_s24 }
 0x237   :  { %15 = sbr.rel (!%p13_p5) target bundleno = 2 (0x2), region = 83 }

// kernel: transformer_classifier_forward.19
= control target key start
LH: loop header
LB: loop body
LE: loop exit
PB: predicated region body
PF: predicated region fallthrough
CT: control target
= control target key end

     0   :  { %8 = vsyncpa [#allocation4], 0  ;;  %s724_s0 = inlined_call_operand.vmem [shape: f32[2,16,32], index: 0, kind: input, shape index: {}]   ;;  %s725_s1 = inlined_call_operand.vmem [shape: f32[32,5], index: 1, kind: input, shape index: {}]   ;;  %s726_s2 = inlined_call_operand.vmem [shape: f32[1,5], index: 2, kind: input, shape index: {}]   ;;  %s727_s3 = inlined_call_operand.hbm [shape: f32[2,1,5], index: 3, kind: output, shape index: {}]  }
   0x1   :  { %10 = vsyncpa [#allocation4 + $0x1], 0  ;;  %s592_s12 = smov 0   ;;  %s594_s13 = smov 0  }
   0x2   :  { %s596_s14 = smov 0   ;;  %s598_s15 = smov 0  }
   0x3   :  { %s600_s16 = smov 0   ;;  %s602_s17 = smov 0  }
   0x4 LB: > { %s396_s18 = sadd.s32 4294967295, %s566_s17   ;;  %s397_s19 = sadd.s32 4294967294, %s566_s17   ;;  %s566_s17 = sphi %s602_s17, %s16_s17   ;;  %s562_s16 = sphi %s600_s16, %s734_s16   ;;  %s558_s15 = sphi %s598_s15, %s733_s15   ;;  %s554_s14 = sphi %s596_s14, %s732_s14   ;;  %s550_s13 = sphi %s594_s13, %s731_s13   ;;  %s546_s12 = sphi %s592_s12, %s730_s12  }
   0x5   : > { %s28_s20 = sadd.s32 1, %s562_s16  ;;  %s105_s21 = sadd.s32 1, %s554_s14 }
   0x6   : > { %p30_p0 = scmp.ge.s32.totalorder %s28_s20, 2  ;;  %p115_p1 = scmp.ne.s32.totalorder %s554_s14, %s550_s13 }
   0x7   : > { %p116_p2 = scmp.eq.s32.totalorder %s396_s18, 1  ;;  %p121_p3 = scmp.ne.s32.totalorder %s550_s13, %s546_s12 }
   0x8   : > { %s736_s20 = smov (%p30_p0, %s28_s20), 0  ;;  %p122_p5 = scmp.eq.s32.totalorder %s397_s19, 1 }
   0x9   : > { %p632_p4 = por %p116_p2, %p115_p1  ;;  %s102_s23 = ssub.s32 %s562_s16, %s736_s20 }
   0xa   : > { %p400_p6 = scmp.ge.s32.totalorder %s566_s17, 1  ;;  %p103_p7 = scmp.eq.s32.totalorder %s102_s23, 0 }
   0xb   : > { %p639_p8 = por %p122_p5, %p121_p3  ;;  %p159_p9 = scmp.lt.s32.totalorder %s566_s17, 3 }
   0xc   : > { %s645_s25 = scalar_select %p103_p7, %s554_s14, %s105_s21  }
   0xd   : > { %p160_p10 = pnand %p400_p6, %p159_p9 }
   0xe   : > { %v234_v0 = vld [vmem:[%s725_s1] sm:$0xff] (!%p160_p10)  ;;  %v235_v1 = vld [vmem:[%s725_s1 + $0x8] sm:$0xff] (!%p160_p10)  ;;  %v236_v2 = vld [vmem:[%s725_s1 + $0x10] sm:$0xff] (!%p160_p10)  ;;  %vm200_vm0 = vcmask (!%p160_p10), 253952   ;;  %v205_v3 = vlaneseq (!%p160_p10)  ;;  %v568_v4 = vmov (!%p160_p10), 0.0|0.0   ;;  %v569_v7 = vmov (!%p160_p10), 0.0  }
   0xf   : > { %163 = sbr.rel (%p160_p10) target bundleno = 283 (0x11b), region = 32  ;;  %424 = vmatprep.subr.bf16.mxu0 (!%p160_p10), %v568_v4  ;;  %v425_v5 = vpack.c.bf16 (!%p160_p10), %v235_v1, %v234_v0  ;;  %v237_v6 = vld [vmem:[%s725_s1 + $0x18] sm:$0xff] (!%p160_p10)  ;;  %201 = vst.msk [vmem:[#allocation2] sm:$0x1] (!%p160_p10), %vm200_vm0, %v569_v7  ;;  %p187_p11 = scmp.lt.s32.totalorder (!%p160_p10), %s558_s15, 1  ;;  %vm570_vm1 = vmmov (!%p160_p10), 0  }
  0x10   : > { %421 = vmatprep.mubr.msk.f32.mxu0 (!%p160_p10), %vm570_vm1, %v569_v7  ;;  %v206_v8 = vshrl.u32 (!%p160_p10), %v205_v3, 7  ;;  %v428_v9 = vpack.c.bf16 (!%p160_p10), %v237_v6, %v236_v2  ;;  %vm216_vm2 = vcmask (!%p160_p10), 261120   ;;  %s184_s18 = sand.u32 (!%p160_p10), 1, %s550_s13   ;;  %v238_v27 = vld [vmem:[%s726_s2] sm:$0x1] (!%p160_p10)  ;;  %s404_s23 = sshll.u32 (!%p160_p10), %s558_s15, 4 }
  0x11   : > { %426 = vmatpush3.bf16.msra.mxu0 (!%p160_p10), %v425_v5  ;;  %s185_s26 = scalar_lea.vmem (!%p160_p10), [#allocation3], %s184_s18  ;;  %vm312_vm4 = vcmask (!%p160_p10), 32768   ;;  %s677_s30 = scalar_lea.hbm (!%p160_p10), %s727_s3, %s404_s23 }
  0x12   : > { %427 = vmatprep.subr.bf16.mxu0 (!%p160_p10), %v568_v4  ;;  %v207_v10 = vadd.s32 (!%p160_p10), 8, %v206_v8  ;;  %s327_s27 = sshll.u32 (!%p160_p10), %s185_s26, 4  ;;  %s315_s4 = scalar_lea.sflag (!%p160_p10), [#allocation4], %s184_s18  ;;  %s679_s27 = int_to_ptr.vmem [resolvable:$true] %s327_s27 }
  0x13   : > { %s488_s5 = scalar_lea.vmem (!%p160_p10), %s679_s27, 16 }
  0x14   : > { %vm212_vm3 = vcmp.lt.s32.totalorder (!%p160_p10), %v207_v10, 12  ;;  %p489_p12 = scmp.ne.s32.totalorder (!%p160_p10), %s679_s27, %s488_s5 }
  0x15   : > { %429 = vmatpush3.bf16.msra.mxu0 (!%p160_p10), %v428_v9 }
  0x16   : > { %s188_s7 = scalar_select %p187_p11, %s558_s15, 1  ;;  %v215_v22 = vld [vmem:[#allocation2] sm:$0x1] }
  0x17   : > { %p490_p13 = pnand %p489_p12, %p632_p4  ;;  %s571_s15 = smov [#allocation3]  }
  0x18   : > { %s407_s8 = sshll.u32 %s188_s7, 4  ;;  %s492_s6 = sshll.u32 %s571_s15, 4  ;;  %s493_s6 = int_to_ptr.vmem [resolvable:$false] %s492_s6 }
  0x19   : > { %s194_s11 = scalar_lea.vmem %s724_s0, %s407_s8  ;;  %p491_p0 = pneg %p490_p13 }
  0x1a   : > { %v202_v11 = vld [vmem:[%s194_s11] sm:$0xff]  ;;  %v203_v12 = vld [vmem:[%s194_s11 + $0x8] sm:$0xff]  ;;  %s494_s7 = scalar_lea.vmem %s493_s6, 32  ;;  %p495_p1 = scmp.lt.s32.totalorder %s679_s27, %s493_s6 }
  0x1b   : > { %v214_v13 = vsel %vm212_vm3, %v203_v12, 0.0  ;;  %v217_v14 = vsel %vm216_vm2, %v202_v11, 0.0  ;;  %p496_p2 = scmp.lt.s32.totalorder %s494_s7, %s488_s5 }
  0x1c   : > { %v218_v15 = vsel %vm216_vm2, %v214_v13, 0.0 }
  0x1d   : > { %v219_v16 = vadd.f32 %v218_v15, %v217_v14  ;;  %p497_p3 = por %p496_p2, %p495_p1 }
  0x1f   : > { %v220_v17 = vrot.slane %v219_v16, 4  ;;  %p498_p5 = pnand %p497_p3, %p491_p0 }
  0x21   : > { %v221_v18 = vadd.f32 %v220_v17, %v219_v16 }
  0x23   : > { %v222_v19 = vrot.slane %v221_v18, 2 }
  0x25   : > { %v223_v20 = vadd.f32 %v222_v19, %v221_v18 }
  0x27   : > { %v224_v21 = vrot.slane %v223_v20, 1 }
  0x29   : > { %v225_v23 = vadd.f32 %v224_v21, %v223_v20 }
  0x2b   : > { %v226_v24 = vadd.f32 %v225_v23, %v215_v22 }
  0x2d   : > { %228 = vst.msk [vmem:[#allocation2] sm:$0x1] %vm200_vm0, %v226_v24 }
  0x34   : > { %v232_v25 = vld [vmem:[#allocation2] sm:$0x1] }
  0x35   : > { %v233_v26 = vmul.f32 0.083333336, %v232_v25 }
  0x37   : > { %422 = vmatmul.mubr.msk.f32.vlgmr.msra.gmra.mrb[0].mxu0 %vm216_vm2, %v233_v26 }
 0x10a   : > { %v308_v28 = vpop.f32.mrb[0].mxu0 }
 0x10b   : > { %v309_v29 = vadd.f32 %v308_v28, %v238_v27  ;;  %v423_v30 = vpop.f32.mrb[1].mxu0 }
 0x10d   : > { %313 = vst.msk [vmem:[%s185_s26] sm:$0x1] %vm312_vm4, %v309_v29 }
 0x10e   : > { %501 = shalt.err (!%p498_p5)
}
 0x10f   : > { %s502_s8 = scalar_lea.hbm %s677_s30, 16  ;;  %s506_s11 = scalar_lea.hbm %s727_s3, 32 }
 0x110   : > { %p503_p6 = scmp.ne.s32.totalorder %s677_s30, %s502_s8  ;;  %p507_p10 = scmp.lt.u32.totalorder %s677_s30, %s727_s3 }
 0x111   : > { %p508_p11 = scmp.lt.u32.totalorder %s506_s11, %s502_s8  ;;  %p510_p13 = scmp.lt.u32.totalorder %s502_s8, %s677_s30 }
 0x112   : > { %p504_p7 = pnand %p503_p6, %p632_p4 }
 0x113   : > { %p509_p12 = por %p508_p11, %p507_p10 }
 0x114   : > { %p505_p9 = pneg %p504_p7 }
 0x115   : > { %p511_p0 = por %p510_p13, %p509_p12 }
 0x117   : > { %p512_p1 = pnand %p511_p0, %p505_p9 }
 0x119   : > { %515 = shalt.err (!%p512_p1)
}
 0x11a   : > { %430 = dma.vmem_to_hbm [thread:$0]  (%p632_p4), %s679_s27, 16, %s677_s30, %s315_s4  }
 0x11b PF: > { %p436_p2 = scmp.ge.s32.totalorder %s566_s17, 2  ;;  %s339_s21 = sand.u32 1, %s546_s12  }
 0x11c   : > { %s340_s23 = scalar_lea.sflag [#allocation4], %s339_s21 }
 0x11d   : > { %p433_p3 = pnand %p436_p2, %p639_p8 }
 0x11f   : > { %541 = dma.done.wait (!%p433_p3), %s340_s23, 16  }
 0x120   : > { %543 = vsyncadd (!%p433_p3), %s340_s23, 4294967280  ;;  %s16_s17 = sadd.s32 1, %s566_s17   ;;  %s730_s12 = smov %s550_s13 }
 0x121   : > { %p13_p5 = scmp.ge.s32.totalorder %s16_s17, 4   ;;  %s731_s13 = smov %s554_s14 }
 0x122   : > { %s732_s14 = smov %s645_s25  ;;  %s733_s15 = smov %s562_s16 }
 0x123   : > { %s734_s16 = smov %s736_s20  ;;  %15 = sbr.rel (!%p13_p5) target bundleno = 4 (0x4), region = 75 }
 0x12a   :  { %344 = vsyncpa [#allocation4], 1 }
 0x12b   :  { %346 = vsyncpa [#allocation4 + $0x1], 1 }

// kernel: transformer_classifier_forward.14
= control target key start
LH: loop header
LB: loop body
LE: loop exit
PB: predicated region body
PF: predicated region fallthrough
CT: control target
= control target key end

     0   :  { %vm41_vm0 = vcmask 261120   ;;  %vm151_vm1 = vcmask 523264   ;;  %s575_s1 = inlined_call_operand.vmem [shape: f32[32,64], index: 1, kind: input, shape index: {}]   ;;  %s576_s0 = inlined_call_operand.vmem [shape: f32[32,32], index: 0, kind: input, shape index: {}]   ;;  %s577_s3 = inlined_call_operand.vmem [shape: f32[64,32], index: 3, kind: input, shape index: {}]   ;;  %s578_s2 = inlined_call_operand.vmem [shape: f32[1,64], index: 2, kind: input, shape index: {}]   ;;  %s579_s4 = inlined_call_operand.vmem [shape: f32[1,32], index: 4, kind: input, shape index: {}]   ;;  %s580_s5 = inlined_call_operand.vmem [shape: f32[1,32], index: 5, kind: input, shape index: {}]   ;;  %s581_s6 = inlined_call_operand.vmem [shape: f32[1,32], index: 6, kind: input, shape index: {}]   ;;  %s582_s7 = inlined_call_operand.vmem [shape: f32[32,32], index: 7, kind: output, shape index: {}]  }
   0x1   :  { %v30_v0 = vld [vmem:[%s575_s1] sm:$0xff]  ;;  %v31_v1 = vld [vmem:[%s575_s1 + $0x8] sm:$0xff]  ;;  %v32_v2 = vld [vmem:[%s575_s1 + $0x10] sm:$0xff] }
   0x2   :  { %v415_v3 = vpack.c.bf16 %v31_v1, %v30_v0  ;;  %v33_v4 = vld [vmem:[%s575_s1 + $0x18] sm:$0xff]  ;;  %v26_v5 = vld [vmem:[%s576_s0] sm:$0xff]  ;;  %v144_v8 = vld [vmem:[%s577_s3 + $0x8] sm:$0xff] }
   0x3   :  { %v419_v6 = vpack.c.bf16 %v33_v4, %v32_v2  ;;  %387 = vmatprep.mubr.msk.f32.mxu0 %vm41_vm0, %v26_v5  ;;  %v143_v7 = vld [vmem:[%s577_s3] sm:$0xff]  ;;  %v145_v9 = vld [vmem:[%s577_s3 + $0x10] sm:$0xff]  ;;  %v146_v10 = vld [vmem:[%s577_s3 + $0x18] sm:$0xff] }
   0x4   :  { %416 = vmatprep.subr.bf16.mxu0 %v415_v3  ;;  %v423_v11 = vpack.c.bf16 %v144_v8, %v143_v7  ;;  %v427_v12 = vpack.c.bf16 %v146_v10, %v145_v9  ;;  %v147_v13 = vld [vmem:[%s577_s3 + $0x20] sm:$0xff]  ;;  %v148_v14 = vld [vmem:[%s577_s3 + $0x28] sm:$0xff]  ;;  %v28_v17 = vld [vmem:[%s576_s0 + $0x10] sm:$0xff] }
   0x5   :  { %418 = vmatpush3.bf16.msra.mxu0 %v415_v3  ;;  %v27_v15 = vld [vmem:[%s576_s0 + $0x8] sm:$0xff]  ;;  %v431_v16 = vpack.c.bf16 %v148_v14, %v147_v13  ;;  %v29_v18 = vld [vmem:[%s576_s0 + $0x18] sm:$0xff]  ;;  %v149_v19 = vld [vmem:[%s577_s3 + $0x30] sm:$0xff] }
   0x6   :  { %420 = vmatprep.subr.bf16.mxu0 %v419_v6  ;;  %424 = vmatprep.subr.bf16.mxu1 %v423_v11  ;;  %v150_v20 = vld [vmem:[%s577_s3 + $0x38] sm:$0xff]  ;;  %v347_v22 = vld [vmem:[%s578_s2] ss:$0 sm:$0xff] }
   0x7   :  { %426 = vmatpush3.bf16.msra.mxu1 %v423_v11  ;;  %v435_v21 = vpack.c.bf16 %v150_v20, %v149_v19  ;;  %v356_v37 = vld [vmem:[%s579_s4] ss:$0 sm:$0xff] }
   0x8   :  { %428 = vmatprep.subr.bf16.mxu1 %v427_v12 }
   0x9   :  { %422 = vmatpush3.bf16.msra.mxu0 %v419_v6 }
   0xb   :  { %430 = vmatpush3.bf16.msra.mxu1 %v427_v12 }
   0xc   :  { %388 = vmatmul.mubr.msk.f32.vlgmr.msra.gmra.mrb[0].mxu0 %vm41_vm0, %v27_v15  ;;  %432 = vmatprep.subr.bf16.mxu1 %v431_v16 }
   0xd   :  { %390 = vmatprep.mubr.msk.f32.mxu0 %vm41_vm0, %v28_v17 }
   0xf   :  { %434 = vmatpush3.bf16.msra.mxu1 %v431_v16 }
  0x10   :  { %391 = vmatmul.mubr.msk.f32.gmra.mrb[2].mxu0 %vm41_vm0, %v29_v18  ;;  %436 = vmatprep.subr.bf16.mxu1 %v435_v21 }
  0x13   :  { %438 = vmatpush3.bf16.msra.mxu1 %v435_v21  ;;  %v357_v21 = vld [vmem:[%s580_s5] ss:$0 sm:$0xff] }
  0xdf   :  { %v389_v23 = vpop.f32.mrb[0].mxu0 }
  0xe0   :  { %v126_v24 = vadd.f32 %v389_v23, %v347_v22  ;;  %v120_v25 = vpop.f32.mrb[1].mxu0  ;;  %v358_v23 = vld [vmem:[%s581_s6] ss:$0 sm:$0xff] }
  0xe1   :  { %v121_v26 = vadd.f32 %v347_v22, %v120_v25 }
  0xe2   :  { %v140_v29 = vmax.f32 %v126_v24, 0.0 }
  0xe3   :  { %v139_v27 = vmax.f32 %v121_v26, 0.0  ;;  %v392_v28 = vpop.f32.mrb[2].mxu0 }
  0xe4   :  { %v136_v30 = vadd.f32 %v392_v28, %v347_v22  ;;  %v130_v31 = vpop.f32.mrb[3].mxu0 }
  0xe5   :  { %v131_v32 = vadd.f32 %v347_v22, %v130_v31  ;;  %409 = vmatprep.mubr.msk.f32.mxu1 %vm151_vm1, %v139_v27 }
  0xe6   :  { %410 = vmatmul.mubr.msk.f32.vlgmr.msra.gmra.mrb[0].mxu1 %vm151_vm1, %v140_v29  ;;  %v142_v34 = vmax.f32 %v136_v30, 0.0 }
  0xe7   :  { %v141_v33 = vmax.f32 %v131_v32, 0.0 }
  0xe9   :  { %412 = vmatprep.mubr.msk.f32.mxu1 %vm151_vm1, %v141_v33 }
  0xea   :  { %413 = vmatmul.mubr.msk.f32.gmra.mrb[2].mxu1 %vm151_vm1, %v142_v34 }
 0x1b9   :  { %v411_v35 = vpop.f32.mrb[0].mxu1 }
 0x1ba   :  { %v230_v36 = vpop.f32.mrb[1].mxu1  ;;  %v250_v38 = vadd.f32 %v411_v35, %v27_v15 }
 0x1bb   :  { %v249_v39 = vadd.f32 %v230_v36, %v26_v5 }
 0x1bc   :  { %v261_v46 = vadd.f32 %v356_v37, %v250_v38 }
 0x1bd   :  { %v414_v40 = vpop.f32.mrb[2].mxu1  ;;  %v260_v41 = vadd.f32 %v356_v37, %v249_v39 }
 0x1be   :  { %v240_v42 = vpop.f32.mrb[3].mxu1  ;;  %v252_v43 = vadd.f32 %v414_v40, %v29_v18  ;;  %v267_v48 = vsel %vm41_vm0, %v261_v46, 0.0 }
 0x1bf   :  { %v251_v44 = vadd.f32 %v240_v42, %v28_v17  ;;  %v264_v45 = vsel %vm41_vm0, %v260_v41, 0.0 }
 0x1c0   :  { %265 = vadd.xlane.f32.xlu0 %v264_v45  ;;  %v263_v50 = vadd.f32 %v356_v37, %v252_v43 }
 0x1c1   :  { %v262_v47 = vadd.f32 %v356_v37, %v251_v44 }
 0x1c2   :  { %v273_v51 = vsel %vm41_vm0, %v263_v50, 0.0 }
 0x1c3   :  { %v270_v49 = vsel %vm41_vm0, %v262_v47, 0.0 }
 0x1c4   :  { %268 = vadd.xlane.f32.xlu0 %v267_v48  ;;  %271 = vadd.xlane.f32.xlu1 %v270_v49 }
 0x1c8   :  { %274 = vadd.xlane.f32.xlu1 %v273_v51 }
 0x24d   :  { %v266_v52 = vpop.xlane.xlu0 %265 }
 0x24e   :  { %v277_v53 = vmul.f32 0.03125, %v266_v52 }
 0x250   :  { %v281_v54 = vsub.f32 %v260_v41, %v277_v53 }
 0x251   :  { %v269_v55 = vpop.xlane.xlu0 %268  ;;  %v272_v56 = vpop.xlane.xlu1 %271 }
 0x252   :  { %v278_v57 = vmul.f32 0.03125, %v269_v55  ;;  %v279_v58 = vmul.f32 0.03125, %v272_v56  ;;  %v285_v59 = vmul.f32 %v281_v54, %v281_v54 }
 0x254   :  { %v282_v60 = vsub.f32 %v261_v46, %v278_v57  ;;  %v283_v61 = vsub.f32 %v262_v47, %v279_v58  ;;  %v289_v62 = vsel %vm41_vm0, %v285_v59, 0.0 }
 0x255   :  { %290 = vadd.xlane.f32.xlu0 %v289_v62  ;;  %v275_v63 = vpop.xlane.xlu1 %274 }
 0x256   :  { %v280_v0 = vmul.f32 0.03125, %v275_v63  ;;  %v286_v1 = vmul.f32 %v282_v60, %v282_v60  ;;  %v287_v2 = vmul.f32 %v283_v61, %v283_v61 }
 0x258   :  { %v284_v3 = vsub.f32 %v263_v50, %v280_v0  ;;  %v292_v4 = vsel %vm41_vm0, %v286_v1, 0.0  ;;  %v295_v5 = vsel %vm41_vm0, %v287_v2, 0.0 }
 0x259   :  { %293 = vadd.xlane.f32.xlu1 %v292_v4  ;;  %296 = vadd.xlane.f32.xlu0 %v295_v5 }
 0x25a   :  { %v288_v6 = vmul.f32 %v284_v3, %v284_v3 }
 0x25c   :  { %v298_v7 = vsel %vm41_vm0, %v288_v6, 0.0 }
 0x25d   :  { %299 = vadd.xlane.f32.xlu1 %v298_v7 }
 0x2e2   :  { %v291_v8 = vpop.xlane.xlu0 %290 }
 0x2e3   :  { %v301_v9 = vmul.f32 0.03125, %v291_v8 }
 0x2e5   :  { %v305_v10 = vadd.f32 1e-05, %v301_v9 }
 0x2e6   :  { %v297_v11 = vpop.xlane.xlu0 %296  ;;  %v294_v12 = vpop.xlane.xlu1 %293 }
 0x2e7   :  { %439 = vrsqrt.f32 %v305_v10  ;;  %v303_v13 = vmul.f32 0.03125, %v297_v11  ;;  %v302_v14 = vmul.f32 0.03125, %v294_v12 }
 0x2e9   :  { %v307_v15 = vadd.f32 1e-05, %v303_v13  ;;  %v306_v16 = vadd.f32 1e-05, %v302_v14 }
 0x2ea   :  { %v300_v17 = vpop.xlane.xlu1 %299 }
 0x2eb   :  { %441 = vrsqrt.f32 %v307_v15  ;;  %v304_v18 = vmul.f32 0.03125, %v300_v17 }
 0x2ec   :  { %443 = vrsqrt.f32 %v306_v16 }
 0x2ed   :  { %v308_v19 = vadd.f32 1e-05, %v304_v18 }
 0x2ef   :  { %445 = vrsqrt.f32 %v308_v19 }
 0x2f1   :  { %v440_v20 = vpop.eup %439 }
 0x2f2   :  { %v313_v22 = vmul.f32 %v440_v20, %v281_v54 }
 0x2f4   :  { %v324_v24 = vmul.f32 %v357_v21, %v313_v22 }
 0x2f5   :  { %v442_v25 = vpop.eup %441 }
 0x2f6   :  { %v444_v26 = vpop.eup %443  ;;  %v335_v27 = vadd.f32 %v358_v23, %v324_v24  ;;  %v315_v28 = vmul.f32 %v442_v25, %v283_v61 }
 0x2f7   :  { %v314_v29 = vmul.f32 %v444_v26, %v282_v60 }
 0x2f8   :  { %339 = vst.msk [vmem:[%s582_s7] sm:$0xff] %vm41_vm0, %v335_v27  ;;  %v326_v30 = vmul.f32 %v357_v21, %v315_v28 }
 0x2f9   :  { %v446_v31 = vpop.eup %445  ;;  %v325_v32 = vmul.f32 %v357_v21, %v314_v29 }
 0x2fa   :  { %v337_v33 = vadd.f32 %v358_v23, %v326_v30  ;;  %v316_v34 = vmul.f32 %v446_v31, %v284_v3 }
 0x2fb   :  { %v336_v35 = vadd.f32 %v358_v23, %v325_v32 }
 0x2fc   :  { %341 = vst.msk [vmem:[%s582_s7 + $0x10] sm:$0xff] %vm41_vm0, %v337_v33  ;;  %v327_v36 = vmul.f32 %v357_v21, %v316_v34 }
 0x2fd   :  { %340 = vst.msk [vmem:[%s582_s7 + $0x8] sm:$0xff] %vm41_vm0, %v336_v35 }
 0x2fe   :  { %v338_v37 = vadd.f32 %v358_v23, %v327_v36 }
 0x300   :  { %342 = vst.msk [vmem:[%s582_s7 + $0x18] sm:$0xff] %vm41_vm0, %v338_v37 }

</bundles_post_ra>
